<compile_context>
chip_gen: v7x
topology: tpu7x:2x2x1
jax: 0.10.0
libtpu: 0.0.40
codegen_flags: <defaults>
</compile_context>

<pallas_src>
import jax
import jax.numpy as jnp
from jax.experimental import pallas as pl
from jax.experimental.pallas import tpu as pltpu

EPS = 1e-12  # torch.nn.functional.normalize default eps


def _l2_normalize(v):
    # matches F.normalize(x, p=2, dim=1): x / max(||x||_2, eps), row-wise.
    # Single exact rsqrt on the EUP.
    sum_sq = jnp.sum(v * v, axis=-1, keepdims=True)
    return v * jax.lax.rsqrt(jnp.maximum(sum_sq, EPS * EPS))


def combilstm_kernel(
    x_ref,        # (N, D)    f32
    w1_ref,       # (D, H)    bf16
    w23_ref,      # (2H, H)   bf16  rows [0:H]=in_linear2, [H:2H]=out_linear1
    wlstm_ref,    # (2H, 4H)  bf16  rows [0:H]=W_ih^T, [H:2H]=W_hh^T; gates (i,f,o,g)
    w4_ref,       # (H, D)    bf16
    b_ref,        # (1, 7H+D) f32   [b1 | b2 | b_lstm(4H) | b3 | b4(D)]
    out_ref,      # (N, D)    f32
    hn_ref,       # (1, H)    f32
    cn_ref,       # (1, H)    f32
    hs_ref,       # (N, H)    f32 scratch (per-step hidden rows)
):
    N, D = x_ref.shape
    H = hn_ref.shape[-1]

    # Static bias slices (lane offsets are multiples of H).
    b1 = b_ref[:, 0:H]
    b2 = b_ref[:, H:2 * H]
    bl = b_ref[:, 2 * H:6 * H]
    b3 = b_ref[:, 6 * H:7 * H]
    b4 = b_ref[:, 7 * H:7 * H + D]

    # ---- input normalization + skip connection ----
    skip = _l2_normalize(x_ref[...])

    # ---- in_linear1 -> relu -> in_linear2 (bf16 operands, f32 accumulate) ----
    h1 = jnp.dot(skip.astype(jnp.bfloat16), w1_ref[...],
                 preferred_element_type=jnp.float32) + b1
    h1 = jnp.maximum(h1, 0.0)
    h2 = jnp.dot(h1.astype(jnp.bfloat16), w23_ref[0:H, :],
                 preferred_element_type=jnp.float32) + b2

    # ---- LSTM (seq_len = N, batch = 1) ----
    # Input-to-gate pre-activations for all steps at once (stays in registers).
    xg = jnp.dot(h2.astype(jnp.bfloat16), wlstm_ref[0:H, :],
                 preferred_element_type=jnp.float32) + bl
    whh = wlstm_ref[H:2 * H, :]                      # (H, 4H) bf16, VMEM-resident

    h = jnp.zeros((1, H), jnp.float32)
    c = jnp.zeros((1, H), jnp.float32)
    # Fully unrolled recurrence: static slices, f32 elementwise gate math.
    for t in range(N):
        gates = xg[t:t + 1, :] + jnp.dot(
            h.astype(jnp.bfloat16), whh, preferred_element_type=jnp.float32
        )                                             # (1, 4H), order (i, f, o, g)
        ifo = jax.nn.sigmoid(gates[:, 0:3 * H])       # one EUP pass over 3H lanes
        g = jnp.tanh(gates[:, 3 * H:4 * H])           # one EUP pass over H lanes
        i = ifo[:, 0:H]
        f = ifo[:, H:2 * H]
        o = ifo[:, 2 * H:3 * H]
        c = f * c + i * g
        h = o * jnp.tanh(c)
        hs_ref[t:t + 1, :] = h                        # static single-row store

    hn_ref[...] = h
    cn_ref[...] = c

    # ---- out_linear1 -> relu -> out_linear2 ----
    hs = hs_ref[...]                                  # (N, H), one load
    o1 = jnp.dot(hs.astype(jnp.bfloat16), w23_ref[H:2 * H, :],
                 preferred_element_type=jnp.float32) + b3
    o1 = jnp.maximum(o1, 0.0)
    o2 = jnp.dot(o1.astype(jnp.bfloat16), w4_ref[...],
                 preferred_element_type=jnp.float32) + b4

    # ---- output normalization + skip ----
    out_ref[...] = _l2_normalize(o2) + skip


def _reorder_gates(w):
    """PyTorch LSTM gate order along the 4H axis is (i, f, g, o).

    Reorder to (i, f, o, g) so the kernel applies ONE sigmoid over the first
    contiguous 3H lanes and ONE tanh over the last H lanes.
    """
    i, f, g, o = jnp.split(w, 4, axis=-1)
    return jnp.concatenate([i, f, o, g], axis=-1)


def prepare_params(params):
    """One-time parameter preprocessing: bf16 casts, gate reorder, slab/bias packing.

    Call once per parameter set; the per-forward wrapper then does no XLA work
    beyond the pallas_call itself.
    """
    bf16 = lambda w: w.astype(jnp.bfloat16)
    w23 = jnp.concatenate([params["w2"], params["w3"]], axis=0)            # (2H, H)
    wlstm = jnp.concatenate(
        [_reorder_gates(params["w_ih"]), _reorder_gates(params["w_hh"])],
        axis=0)                                                            # (2H, 4H)
    biases = jnp.concatenate(
        [params["b1"], params["b2"], _reorder_gates(params["b_lstm"]),
         params["b3"], params["b4"]], axis=-1)                             # (1, 7H+D)
    return {
        "w1": bf16(params["w1"]),
        "w23": bf16(w23),
        "wlstm": bf16(wlstm),
        "w4": bf16(params["w4"]),
        "biases": biases.astype(jnp.float32),
    }


@jax.jit
def combilstm_forward(x, prep):
    N, D = x.shape
    H = prep["w1"].shape[1]

    flops = 2 * N * (D * H          # in_linear1
                     + H * H        # in_linear2
                     + H * 4 * H    # input-to-gate (all steps)
                     + H * 4 * H    # hidden-to-gate (recurrence, all steps)
                     + H * H        # out_linear1
                     + H * D)       # out_linear2
    transcendentals = N * (5 * H + 2)   # per-step sigmoid/tanh + 2 rsqrt per row
    bytes_accessed = (
        4 * (2 * N * D + 2 * H)                              # x, out, h_n, c_n
        + 2 * (D * H + 2 * H * H + 2 * H * 4 * H + H * D)    # bf16 weights
        + 4 * (7 * H + D))                                   # packed biases

    vmem = pl.BlockSpec(memory_space=pltpu.MemorySpace.VMEM)
    out, h_n, c_n = pl.pallas_call(
        combilstm_kernel,
        out_shape=(
            jax.ShapeDtypeStruct((N, D), jnp.float32),
            jax.ShapeDtypeStruct((1, H), jnp.float32),
            jax.ShapeDtypeStruct((1, H), jnp.float32),
        ),
        in_specs=[vmem] * 6,
        out_specs=(vmem, vmem, vmem),
        scratch_shapes=[pltpu.VMEM((N, H), jnp.float32)],
        cost_estimate=pl.CostEstimate(
            flops=flops,
            transcendentals=transcendentals,
            bytes_accessed=bytes_accessed),
    )(x, prep["w1"], prep["w23"], prep["wlstm"], prep["w4"], prep["biases"])
    # PyTorch returns hidden = (h_n, c_n), each of shape (num_layers=1, batch=1, H).
    return out, (h_n.reshape(1, 1, H), c_n.reshape(1, 1, H))


def init_params(key, in_dim, hidden, out_dim):
    """Deterministic init mirroring the module's shapes.

    Linear weights ~ xavier_normal(gain=sqrt(2)); LSTM ih/hh ~ xavier_normal.
    All weights stored transposed (in_features, out_features) so the kernel
    computes `x @ W`.  LSTM gate order here is PyTorch's (i, f, g, o); the
    one-time prepare step permutes it to (i, f, o, g) for the kernel.
    """
    ks = jax.random.split(key, 12)

    def xavier(k, fan_in, fan_out, gain):
        std = gain * jnp.sqrt(2.0 / (fan_in + fan_out))
        return std * jax.random.normal(k, (fan_in, fan_out), jnp.float32)

    def unif_bias(k, fan_in, n):
        bound = 1.0 / jnp.sqrt(fan_in)
        return jax.random.uniform(k, (1, n), jnp.float32, -bound, bound)

    g = float(jnp.sqrt(2.0))
    params = {
        "w1": xavier(ks[0], in_dim, hidden, g),
        "b1": unif_bias(ks[1], in_dim, hidden),
        "w2": xavier(ks[2], hidden, hidden, g),
        "b2": unif_bias(ks[3], hidden, hidden),
        # LSTM: weight_ih_l0 (4H,H), weight_hh_l0 (4H,H) -> stored (H,4H)
        "w_ih": xavier(ks[4], hidden, 4 * hidden, 1.0),
        "w_hh": xavier(ks[5], hidden, 4 * hidden, 1.0),
        # combined bias b_ih + b_hh
        "b_lstm": unif_bias(ks[6], hidden, 4 * hidden)
        + unif_bias(ks[7], hidden, 4 * hidden),
        "w3": xavier(ks[8], hidden, hidden, g),
        "b3": unif_bias(ks[9], hidden, hidden),
        "w4": xavier(ks[10], hidden, out_dim, g),
        "b4": unif_bias(ks[11], hidden, out_dim),
    }
    return params


if __name__ == "__main__":
    # Small shapes consistent with the module's forward:
    # x: (seq=8, in_dim=256); hidden_units=128; out_dim=in_dim (required by skip add).
    N, IN_DIM, HIDDEN = 8, 256, 128
    key = jax.random.PRNGKey(0)
    kx, kp = jax.random.split(key)
    x = jax.random.normal(kx, (N, IN_DIM), jnp.float32)

    params = init_params(kp, IN_DIM, HIDDEN, IN_DIM)
    prep = prepare_params(params)           # one-time preprocessing (not per call)

    out, (h_n, c_n) = combilstm_forward(x, prep)
    jax.block_until_ready((out, h_n, c_n))

    assert out.shape == (N, IN_DIM)
    assert h_n.shape == (1, 1, HIDDEN) and c_n.shape == (1, 1, HIDDEN)
    assert bool(jnp.all(jnp.isfinite(out)))
    print("KERNEL_OK")
</pallas_src>

<mosaic_0001>
module attributes {stable_mosaic.version = 11 : i64} {
  func.func @combilstm_kernel(%arg0: memref<8x256xf32, #tpu.memory_space<vmem>>, %arg1: memref<256x128xbf16, #tpu.memory_space<vmem>>, %arg2: memref<256x128xbf16, #tpu.memory_space<vmem>>, %arg3: memref<256x512xbf16, #tpu.memory_space<vmem>>, %arg4: memref<128x256xbf16, #tpu.memory_space<vmem>>, %arg5: memref<1x1152xf32, #tpu.memory_space<vmem>>, %arg6: memref<8x256xf32, #tpu.memory_space<vmem>>, %arg7: memref<1x128xf32, #tpu.memory_space<vmem>>, %arg8: memref<1x128xf32, #tpu.memory_space<vmem>>, %arg9: memref<8x128xf32, #tpu.memory_space<vmem>>) attributes {dimension_semantics = [], scalar_prefetch = 0 : i64, scratch_operands = 1 : i64, tpu.core_type = #tpu.core_type<tc>} {
    %c0 = arith.constant 0 : index
    %c0_0 = arith.constant 0 : index
    %0 = vector.load %arg5[%c0, %c0_0] : memref<1x1152xf32, #tpu.memory_space<vmem>>, vector<1x128xf32>
    %c0_1 = arith.constant 0 : index
    %c128 = arith.constant 128 : index
    %1 = vector.load %arg5[%c0_1, %c128] : memref<1x1152xf32, #tpu.memory_space<vmem>>, vector<1x128xf32>
    %c0_2 = arith.constant 0 : index
    %c256 = arith.constant 256 : index
    %2 = vector.load %arg5[%c0_2, %c256] : memref<1x1152xf32, #tpu.memory_space<vmem>>, vector<1x512xf32>
    %c0_3 = arith.constant 0 : index
    %c768 = arith.constant 768 : index
    %3 = vector.load %arg5[%c0_3, %c768] : memref<1x1152xf32, #tpu.memory_space<vmem>>, vector<1x128xf32>
    %c0_4 = arith.constant 0 : index
    %c896 = arith.constant 896 : index
    %4 = vector.load %arg5[%c0_4, %c896] : memref<1x1152xf32, #tpu.memory_space<vmem>>, vector<1x256xf32>
    %c0_5 = arith.constant 0 : index
    %c0_6 = arith.constant 0 : index
    %5 = vector.load %arg0[%c0_5, %c0_6] : memref<8x256xf32, #tpu.memory_space<vmem>>, vector<8x256xf32>
    %6 = arith.mulf %5, %5 : vector<8x256xf32>
    %cst = arith.constant dense<0.000000e+00> : vector<8xf32>
    %7 = vector.multi_reduction <add>, %6, %cst [1] : vector<8x256xf32> to vector<8xf32>
    %8 = vector.shape_cast %7 : vector<8xf32> to vector<8x1xf32>
    %cst_7 = arith.constant 1.000000e-24 : f32
    %9 = vector.broadcast %cst_7 : f32 to vector<8x1xf32>
    %10 = arith.maximumf %8, %9 : vector<8x1xf32>
    %11 = math.rsqrt %10 : vector<8x1xf32>
    %12 = vector.broadcast %11 : vector<8x1xf32> to vector<8x256xf32>
    %13 = arith.mulf %5, %12 : vector<8x256xf32>
    %14 = arith.truncf %13 : vector<8x256xf32> to vector<8x256xbf16>
    %c0_8 = arith.constant 0 : index
    %c0_9 = arith.constant 0 : index
    %15 = vector.load %arg1[%c0_8, %c0_9] : memref<256x128xbf16, #tpu.memory_space<vmem>>, vector<256x128xbf16>
    %cst_10 = arith.constant dense<0.000000e+00> : vector<8x128xf32>
    %16 = tpu.matmul %14, %15, %cst_10 {dimension_numbers = #tpu.dot_dimension_numbers<[1], [0], [0], [1], [0, 0, 1, 1], [], []>} : vector<8x256xbf16>, vector<256x128xbf16>, vector<8x128xf32> -> vector<8x128xf32>
    %17 = vector.broadcast %0 : vector<1x128xf32> to vector<8x128xf32>
    %18 = arith.addf %16, %17 : vector<8x128xf32>
    %cst_11 = arith.constant 0.000000e+00 : f32
    %19 = vector.broadcast %cst_11 : f32 to vector<8x128xf32>
    %20 = arith.maximumf %18, %19 : vector<8x128xf32>
    %21 = arith.truncf %20 : vector<8x128xf32> to vector<8x128xbf16>
    %c0_12 = arith.constant 0 : index
    %c0_13 = arith.constant 0 : index
    %22 = vector.load %arg2[%c0_12, %c0_13] : memref<256x128xbf16, #tpu.memory_space<vmem>>, vector<128x128xbf16>
    %cst_14 = arith.constant dense<0.000000e+00> : vector<8x128xf32>
    %23 = tpu.matmul %21, %22, %cst_14 {dimension_numbers = #tpu.dot_dimension_numbers<[1], [0], [0], [1], [0, 0, 1, 1], [], []>} : vector<8x128xbf16>, vector<128x128xbf16>, vector<8x128xf32> -> vector<8x128xf32>
    %24 = vector.broadcast %1 : vector<1x128xf32> to vector<8x128xf32>
    %25 = arith.addf %23, %24 : vector<8x128xf32>
    %26 = arith.truncf %25 : vector<8x128xf32> to vector<8x128xbf16>
    %c0_15 = arith.constant 0 : index
    %c0_16 = arith.constant 0 : index
    %27 = vector.load %arg3[%c0_15, %c0_16] : memref<256x512xbf16, #tpu.memory_space<vmem>>, vector<128x512xbf16>
    %cst_17 = arith.constant dense<0.000000e+00> : vector<8x512xf32>
    %28 = tpu.matmul %26, %27, %cst_17 {dimension_numbers = #tpu.dot_dimension_numbers<[1], [0], [0], [1], [0, 0, 1, 1], [], []>} : vector<8x128xbf16>, vector<128x512xbf16>, vector<8x512xf32> -> vector<8x512xf32>
    %29 = vector.broadcast %2 : vector<1x512xf32> to vector<8x512xf32>
    %30 = arith.addf %28, %29 : vector<8x512xf32>
    %c128_18 = arith.constant 128 : index
    %c0_19 = arith.constant 0 : index
    %31 = vector.load %arg3[%c128_18, %c0_19] : memref<256x512xbf16, #tpu.memory_space<vmem>>, vector<128x512xbf16>
    %cst_20 = arith.constant 0.000000e+00 : f32
    %32 = vector.broadcast %cst_20 : f32 to vector<1x128xf32>
    %cst_21 = arith.constant 0.000000e+00 : f32
    %33 = vector.broadcast %cst_21 : f32 to vector<1x128xf32>
    %34 = vector.extract_strided_slice %30 {offsets = [0, 0], sizes = [1, 512], strides = [1, 1]} : vector<8x512xf32> to vector<1x512xf32>
    %35 = arith.truncf %32 : vector<1x128xf32> to vector<1x128xbf16>
    %cst_22 = arith.constant dense<0.000000e+00> : vector<1x512xf32>
    %36 = tpu.matmul %35, %31, %cst_22 {dimension_numbers = #tpu.dot_dimension_numbers<[1], [0], [0], [1], [0, 0, 1, 1], [], []>} : vector<1x128xbf16>, vector<128x512xbf16>, vector<1x512xf32> -> vector<1x512xf32>
    %37 = arith.addf %34, %36 : vector<1x512xf32>
    %38 = vector.extract_strided_slice %37 {offsets = [0, 0], sizes = [1, 384], strides = [1, 1]} : vector<1x512xf32> to vector<1x384xf32>
    %39 = arith.negf %38 : vector<1x384xf32>
    %40 = math.exp %39 : vector<1x384xf32>
    %cst_23 = arith.constant 1.000000e+00 : f32
    %41 = vector.broadcast %cst_23 : f32 to vector<1x384xf32>
    %42 = arith.addf %41, %40 : vector<1x384xf32>
    %43 = arith.divf %41, %42 : vector<1x384xf32>
    %44 = vector.extract_strided_slice %37 {offsets = [0, 384], sizes = [1, 128], strides = [1, 1]} : vector<1x512xf32> to vector<1x128xf32>
    %45 = math.tanh %44 : vector<1x128xf32>
    %46 = vector.extract_strided_slice %43 {offsets = [0, 0], sizes = [1, 128], strides = [1, 1]} : vector<1x384xf32> to vector<1x128xf32>
    %47 = vector.extract_strided_slice %43 {offsets = [0, 128], sizes = [1, 128], strides = [1, 1]} : vector<1x384xf32> to vector<1x128xf32>
    %48 = vector.extract_strided_slice %43 {offsets = [0, 256], sizes = [1, 128], strides = [1, 1]} : vector<1x384xf32> to vector<1x128xf32>
    %49 = arith.mulf %47, %33 : vector<1x128xf32>
    %50 = arith.mulf %46, %45 : vector<1x128xf32>
    %51 = arith.addf %49, %50 : vector<1x128xf32>
    %52 = math.tanh %51 : vector<1x128xf32>
    %53 = arith.mulf %48, %52 : vector<1x128xf32>
    %c0_24 = arith.constant 0 : index
    %c0_25 = arith.constant 0 : index
    %54 = vector.load %arg9[%c0_24, %c0_25] : memref<8x128xf32, #tpu.memory_space<vmem>>, vector<1x128xf32>
    tpu.vector_store %arg9[%c0_24, %c0_25], %53 {strides = array<i32>} : memref<8x128xf32, #tpu.memory_space<vmem>>, vector<1x128xf32>,
    %55 = vector.extract_strided_slice %30 {offsets = [1, 0], sizes = [1, 512], strides = [1, 1]} : vector<8x512xf32> to vector<1x512xf32>
    %56 = arith.truncf %53 : vector<1x128xf32> to vector<1x128xbf16>
    %cst_26 = arith.constant dense<0.000000e+00> : vector<1x512xf32>
    %57 = tpu.matmul %56, %31, %cst_26 {dimension_numbers = #tpu.dot_dimension_numbers<[1], [0], [0], [1], [0, 0, 1, 1], [], []>} : vector<1x128xbf16>, vector<128x512xbf16>, vector<1x512xf32> -> vector<1x512xf32>
    %58 = arith.addf %55, %57 : vector<1x512xf32>
    %59 = vector.extract_strided_slice %58 {offsets = [0, 0], sizes = [1, 384], strides = [1, 1]} : vector<1x512xf32> to vector<1x384xf32>
    %60 = arith.negf %59 : vector<1x384xf32>
    %61 = math.exp %60 : vector<1x384xf32>
    %cst_27 = arith.constant 1.000000e+00 : f32
    %62 = vector.broadcast %cst_27 : f32 to vector<1x384xf32>
    %63 = arith.addf %62, %61 : vector<1x384xf32>
    %64 = arith.divf %62, %63 : vector<1x384xf32>
    %65 = vector.extract_strided_slice %58 {offsets = [0, 384], sizes = [1, 128], strides = [1, 1]} : vector<1x512xf32> to vector<1x128xf32>
    %66 = math.tanh %65 : vector<1x128xf32>
    %67 = vector.extract_strided_slice %64 {offsets = [0, 0], sizes = [1, 128], strides = [1, 1]} : vector<1x384xf32> to vector<1x128xf32>
    %68 = vector.extract_strided_slice %64 {offsets = [0, 128], sizes = [1, 128], strides = [1, 1]} : vector<1x384xf32> to vector<1x128xf32>
    %69 = vector.extract_strided_slice %64 {offsets = [0, 256], sizes = [1, 128], strides = [1, 1]} : vector<1x384xf32> to vector<1x128xf32>
    %70 = arith.mulf %68, %51 : vector<1x128xf32>
    %71 = arith.mulf %67, %66 : vector<1x128xf32>
    %72 = arith.addf %70, %71 : vector<1x128xf32>
    %73 = math.tanh %72 : vector<1x128xf32>
    %74 = arith.mulf %69, %73 : vector<1x128xf32>
    %c1 = arith.constant 1 : index
    %c0_28 = arith.constant 0 : index
    %75 = vector.load %arg9[%c1, %c0_28] : memref<8x128xf32, #tpu.memory_space<vmem>>, vector<1x128xf32>
    tpu.vector_store %arg9[%c1, %c0_28], %74 {strides = array<i32>} : memref<8x128xf32, #tpu.memory_space<vmem>>, vector<1x128xf32>,
    %76 = vector.extract_strided_slice %30 {offsets = [2, 0], sizes = [1, 512], strides = [1, 1]} : vector<8x512xf32> to vector<1x512xf32>
    %77 = arith.truncf %74 : vector<1x128xf32> to vector<1x128xbf16>
    %cst_29 = arith.constant dense<0.000000e+00> : vector<1x512xf32>
    %78 = tpu.matmul %77, %31, %cst_29 {dimension_numbers = #tpu.dot_dimension_numbers<[1], [0], [0], [1], [0, 0, 1, 1], [], []>} : vector<1x128xbf16>, vector<128x512xbf16>, vector<1x512xf32> -> vector<1x512xf32>
    %79 = arith.addf %76, %78 : vector<1x512xf32>
    %80 = vector.extract_strided_slice %79 {offsets = [0, 0], sizes = [1, 384], strides = [1, 1]} : vector<1x512xf32> to vector<1x384xf32>
    %81 = arith.negf %80 : vector<1x384xf32>
    %82 = math.exp %81 : vector<1x384xf32>
    %cst_30 = arith.constant 1.000000e+00 : f32
    %83 = vector.broadcast %cst_30 : f32 to vector<1x384xf32>
    %84 = arith.addf %83, %82 : vector<1x384xf32>
    %85 = arith.divf %83, %84 : vector<1x384xf32>
    %86 = vector.extract_strided_slice %79 {offsets = [0, 384], sizes = [1, 128], strides = [1, 1]} : vector<1x512xf32> to vector<1x128xf32>
    %87 = math.tanh %86 : vector<1x128xf32>
    %88 = vector.extract_strided_slice %85 {offsets = [0, 0], sizes = [1, 128], strides = [1, 1]} : vector<1x384xf32> to vector<1x128xf32>
    %89 = vector.extract_strided_slice %85 {offsets = [0, 128], sizes = [1, 128], strides = [1, 1]} : vector<1x384xf32> to vector<1x128xf32>
    %90 = vector.extract_strided_slice %85 {offsets = [0, 256], sizes = [1, 128], strides = [1, 1]} : vector<1x384xf32> to vector<1x128xf32>
    %91 = arith.mulf %89, %72 : vector<1x128xf32>
    %92 = arith.mulf %88, %87 : vector<1x128xf32>
    %93 = arith.addf %91, %92 : vector<1x128xf32>
    %94 = math.tanh %93 : vector<1x128xf32>
    %95 = arith.mulf %90, %94 : vector<1x128xf32>
    %c2 = arith.constant 2 : index
    %c0_31 = arith.constant 0 : index
    %96 = vector.load %arg9[%c2, %c0_31] : memref<8x128xf32, #tpu.memory_space<vmem>>, vector<1x128xf32>
    tpu.vector_store %arg9[%c2, %c0_31], %95 {strides = array<i32>} : memref<8x128xf32, #tpu.memory_space<vmem>>, vector<1x128xf32>,
    %97 = vector.extract_strided_slice %30 {offsets = [3, 0], sizes = [1, 512], strides = [1, 1]} : vector<8x512xf32> to vector<1x512xf32>
    %98 = arith.truncf %95 : vector<1x128xf32> to vector<1x128xbf16>
    %cst_32 = arith.constant dense<0.000000e+00> : vector<1x512xf32>
    %99 = tpu.matmul %98, %31, %cst_32 {dimension_numbers = #tpu.dot_dimension_numbers<[1], [0], [0], [1], [0, 0, 1, 1], [], []>} : vector<1x128xbf16>, vector<128x512xbf16>, vector<1x512xf32> -> vector<1x512xf32>
    %100 = arith.addf %97, %99 : vector<1x512xf32>
    %101 = vector.extract_strided_slice %100 {offsets = [0, 0], sizes = [1, 384], strides = [1, 1]} : vector<1x512xf32> to vector<1x384xf32>
    %102 = arith.negf %101 : vector<1x384xf32>
    %103 = math.exp %102 : vector<1x384xf32>
    %cst_33 = arith.constant 1.000000e+00 : f32
    %104 = vector.broadcast %cst_33 : f32 to vector<1x384xf32>
    %105 = arith.addf %104, %103 : vector<1x384xf32>
    %106 = arith.divf %104, %105 : vector<1x384xf32>
    %107 = vector.extract_strided_slice %100 {offsets = [0, 384], sizes = [1, 128], strides = [1, 1]} : vector<1x512xf32> to vector<1x128xf32>
    %108 = math.tanh %107 : vector<1x128xf32>
    %109 = vector.extract_strided_slice %106 {offsets = [0, 0], sizes = [1, 128], strides = [1, 1]} : vector<1x384xf32> to vector<1x128xf32>
    %110 = vector.extract_strided_slice %106 {offsets = [0, 128], sizes = [1, 128], strides = [1, 1]} : vector<1x384xf32> to vector<1x128xf32>
    %111 = vector.extract_strided_slice %106 {offsets = [0, 256], sizes = [1, 128], strides = [1, 1]} : vector<1x384xf32> to vector<1x128xf32>
    %112 = arith.mulf %110, %93 : vector<1x128xf32>
    %113 = arith.mulf %109, %108 : vector<1x128xf32>
    %114 = arith.addf %112, %113 : vector<1x128xf32>
    %115 = math.tanh %114 : vector<1x128xf32>
    %116 = arith.mulf %111, %115 : vector<1x128xf32>
    %c3 = arith.constant 3 : index
    %c0_34 = arith.constant 0 : index
    %117 = vector.load %arg9[%c3, %c0_34] : memref<8x128xf32, #tpu.memory_space<vmem>>, vector<1x128xf32>
    tpu.vector_store %arg9[%c3, %c0_34], %116 {strides = array<i32>} : memref<8x128xf32, #tpu.memory_space<vmem>>, vector<1x128xf32>,
    %118 = vector.extract_strided_slice %30 {offsets = [4, 0], sizes = [1, 512], strides = [1, 1]} : vector<8x512xf32> to vector<1x512xf32>
    %119 = arith.truncf %116 : vector<1x128xf32> to vector<1x128xbf16>
    %cst_35 = arith.constant dense<0.000000e+00> : vector<1x512xf32>
    %120 = tpu.matmul %119, %31, %cst_35 {dimension_numbers = #tpu.dot_dimension_numbers<[1], [0], [0], [1], [0, 0, 1, 1], [], []>} : vector<1x128xbf16>, vector<128x512xbf16>, vector<1x512xf32> -> vector<1x512xf32>
    %121 = arith.addf %118, %120 : vector<1x512xf32>
    %122 = vector.extract_strided_slice %121 {offsets = [0, 0], sizes = [1, 384], strides = [1, 1]} : vector<1x512xf32> to vector<1x384xf32>
    %123 = arith.negf %122 : vector<1x384xf32>
    %124 = math.exp %123 : vector<1x384xf32>
    %cst_36 = arith.constant 1.000000e+00 : f32
    %125 = vector.broadcast %cst_36 : f32 to vector<1x384xf32>
    %126 = arith.addf %125, %124 : vector<1x384xf32>
    %127 = arith.divf %125, %126 : vector<1x384xf32>
    %128 = vector.extract_strided_slice %121 {offsets = [0, 384], sizes = [1, 128], strides = [1, 1]} : vector<1x512xf32> to vector<1x128xf32>
    %129 = math.tanh %128 : vector<1x128xf32>
    %130 = vector.extract_strided_slice %127 {offsets = [0, 0], sizes = [1, 128], strides = [1, 1]} : vector<1x384xf32> to vector<1x128xf32>
    %131 = vector.extract_strided_slice %127 {offsets = [0, 128], sizes = [1, 128], strides = [1, 1]} : vector<1x384xf32> to vector<1x128xf32>
    %132 = vector.extract_strided_slice %127 {offsets = [0, 256], sizes = [1, 128], strides = [1, 1]} : vector<1x384xf32> to vector<1x128xf32>
    %133 = arith.mulf %131, %114 : vector<1x128xf32>
    %134 = arith.mulf %130, %129 : vector<1x128xf32>
    %135 = arith.addf %133, %134 : vector<1x128xf32>
    %136 = math.tanh %135 : vector<1x128xf32>
    %137 = arith.mulf %132, %136 : vector<1x128xf32>
    %c4 = arith.constant 4 : index
    %c0_37 = arith.constant 0 : index
    %138 = vector.load %arg9[%c4, %c0_37] : memref<8x128xf32, #tpu.memory_space<vmem>>, vector<1x128xf32>
    tpu.vector_store %arg9[%c4, %c0_37], %137 {strides = array<i32>} : memref<8x128xf32, #tpu.memory_space<vmem>>, vector<1x128xf32>,
    %139 = vector.extract_strided_slice %30 {offsets = [5, 0], sizes = [1, 512], strides = [1, 1]} : vector<8x512xf32> to vector<1x512xf32>
    %140 = arith.truncf %137 : vector<1x128xf32> to vector<1x128xbf16>
    %cst_38 = arith.constant dense<0.000000e+00> : vector<1x512xf32>
    %141 = tpu.matmul %140, %31, %cst_38 {dimension_numbers = #tpu.dot_dimension_numbers<[1], [0], [0], [1], [0, 0, 1, 1], [], []>} : vector<1x128xbf16>, vector<128x512xbf16>, vector<1x512xf32> -> vector<1x512xf32>
    %142 = arith.addf %139, %141 : vector<1x512xf32>
    %143 = vector.extract_strided_slice %142 {offsets = [0, 0], sizes = [1, 384], strides = [1, 1]} : vector<1x512xf32> to vector<1x384xf32>
    %144 = arith.negf %143 : vector<1x384xf32>
    %145 = math.exp %144 : vector<1x384xf32>
    %cst_39 = arith.constant 1.000000e+00 : f32
    %146 = vector.broadcast %cst_39 : f32 to vector<1x384xf32>
    %147 = arith.addf %146, %145 : vector<1x384xf32>
    %148 = arith.divf %146, %147 : vector<1x384xf32>
    %149 = vector.extract_strided_slice %142 {offsets = [0, 384], sizes = [1, 128], strides = [1, 1]} : vector<1x512xf32> to vector<1x128xf32>
    %150 = math.tanh %149 : vector<1x128xf32>
    %151 = vector.extract_strided_slice %148 {offsets = [0, 0], sizes = [1, 128], strides = [1, 1]} : vector<1x384xf32> to vector<1x128xf32>
    %152 = vector.extract_strided_slice %148 {offsets = [0, 128], sizes = [1, 128], strides = [1, 1]} : vector<1x384xf32> to vector<1x128xf32>
    %153 = vector.extract_strided_slice %148 {offsets = [0, 256], sizes = [1, 128], strides = [1, 1]} : vector<1x384xf32> to vector<1x128xf32>
    %154 = arith.mulf %152, %135 : vector<1x128xf32>
    %155 = arith.mulf %151, %150 : vector<1x128xf32>
    %156 = arith.addf %154, %155 : vector<1x128xf32>
    %157 = math.tanh %156 : vector<1x128xf32>
    %158 = arith.mulf %153, %157 : vector<1x128xf32>
    %c5 = arith.constant 5 : index
    %c0_40 = arith.constant 0 : index
    %159 = vector.load %arg9[%c5, %c0_40] : memref<8x128xf32, #tpu.memory_space<vmem>>, vector<1x128xf32>
    tpu.vector_store %arg9[%c5, %c0_40], %158 {strides = array<i32>} : memref<8x128xf32, #tpu.memory_space<vmem>>, vector<1x128xf32>,
    %160 = vector.extract_strided_slice %30 {offsets = [6, 0], sizes = [1, 512], strides = [1, 1]} : vector<8x512xf32> to vector<1x512xf32>
    %161 = arith.truncf %158 : vector<1x128xf32> to vector<1x128xbf16>
    %cst_41 = arith.constant dense<0.000000e+00> : vector<1x512xf32>
    %162 = tpu.matmul %161, %31, %cst_41 {dimension_numbers = #tpu.dot_dimension_numbers<[1], [0], [0], [1], [0, 0, 1, 1], [], []>} : vector<1x128xbf16>, vector<128x512xbf16>, vector<1x512xf32> -> vector<1x512xf32>
    %163 = arith.addf %160, %162 : vector<1x512xf32>
    %164 = vector.extract_strided_slice %163 {offsets = [0, 0], sizes = [1, 384], strides = [1, 1]} : vector<1x512xf32> to vector<1x384xf32>
    %165 = arith.negf %164 : vector<1x384xf32>
    %166 = math.exp %165 : vector<1x384xf32>
    %cst_42 = arith.constant 1.000000e+00 : f32
    %167 = vector.broadcast %cst_42 : f32 to vector<1x384xf32>
    %168 = arith.addf %167, %166 : vector<1x384xf32>
    %169 = arith.divf %167, %168 : vector<1x384xf32>
    %170 = vector.extract_strided_slice %163 {offsets = [0, 384], sizes = [1, 128], strides = [1, 1]} : vector<1x512xf32> to vector<1x128xf32>
    %171 = math.tanh %170 : vector<1x128xf32>
    %172 = vector.extract_strided_slice %169 {offsets = [0, 0], sizes = [1, 128], strides = [1, 1]} : vector<1x384xf32> to vector<1x128xf32>
    %173 = vector.extract_strided_slice %169 {offsets = [0, 128], sizes = [1, 128], strides = [1, 1]} : vector<1x384xf32> to vector<1x128xf32>
    %174 = vector.extract_strided_slice %169 {offsets = [0, 256], sizes = [1, 128], strides = [1, 1]} : vector<1x384xf32> to vector<1x128xf32>
    %175 = arith.mulf %173, %156 : vector<1x128xf32>
    %176 = arith.mulf %172, %171 : vector<1x128xf32>
    %177 = arith.addf %175, %176 : vector<1x128xf32>
    %178 = math.tanh %177 : vector<1x128xf32>
    %179 = arith.mulf %174, %178 : vector<1x128xf32>
    %c6 = arith.constant 6 : index
    %c0_43 = arith.constant 0 : index
    %180 = vector.load %arg9[%c6, %c0_43] : memref<8x128xf32, #tpu.memory_space<vmem>>, vector<1x128xf32>
    tpu.vector_store %arg9[%c6, %c0_43], %179 {strides = array<i32>} : memref<8x128xf32, #tpu.memory_space<vmem>>, vector<1x128xf32>,
    %181 = vector.extract_strided_slice %30 {offsets = [7, 0], sizes = [1, 512], strides = [1, 1]} : vector<8x512xf32> to vector<1x512xf32>
    %182 = arith.truncf %179 : vector<1x128xf32> to vector<1x128xbf16>
    %cst_44 = arith.constant dense<0.000000e+00> : vector<1x512xf32>
    %183 = tpu.matmul %182, %31, %cst_44 {dimension_numbers = #tpu.dot_dimension_numbers<[1], [0], [0], [1], [0, 0, 1, 1], [], []>} : vector<1x128xbf16>, vector<128x512xbf16>, vector<1x512xf32> -> vector<1x512xf32>
    %184 = arith.addf %181, %183 : vector<1x512xf32>
    %185 = vector.extract_strided_slice %184 {offsets = [0, 0], sizes = [1, 384], strides = [1, 1]} : vector<1x512xf32> to vector<1x384xf32>
    %186 = arith.negf %185 : vector<1x384xf32>
    %187 = math.exp %186 : vector<1x384xf32>
    %cst_45 = arith.constant 1.000000e+00 : f32
    %188 = vector.broadcast %cst_45 : f32 to vector<1x384xf32>
    %189 = arith.addf %188, %187 : vector<1x384xf32>
    %190 = arith.divf %188, %189 : vector<1x384xf32>
    %191 = vector.extract_strided_slice %184 {offsets = [0, 384], sizes = [1, 128], strides = [1, 1]} : vector<1x512xf32> to vector<1x128xf32>
    %192 = math.tanh %191 : vector<1x128xf32>
    %193 = vector.extract_strided_slice %190 {offsets = [0, 0], sizes = [1, 128], strides = [1, 1]} : vector<1x384xf32> to vector<1x128xf32>
    %194 = vector.extract_strided_slice %190 {offsets = [0, 128], sizes = [1, 128], strides = [1, 1]} : vector<1x384xf32> to vector<1x128xf32>
    %195 = vector.extract_strided_slice %190 {offsets = [0, 256], sizes = [1, 128], strides = [1, 1]} : vector<1x384xf32> to vector<1x128xf32>
    %196 = arith.mulf %194, %177 : vector<1x128xf32>
    %197 = arith.mulf %193, %192 : vector<1x128xf32>
    %198 = arith.addf %196, %197 : vector<1x128xf32>
    %199 = math.tanh %198 : vector<1x128xf32>
    %200 = arith.mulf %195, %199 : vector<1x128xf32>
    %c7 = arith.constant 7 : index
    %c0_46 = arith.constant 0 : index
    %201 = vector.load %arg9[%c7, %c0_46] : memref<8x128xf32, #tpu.memory_space<vmem>>, vector<1x128xf32>
    tpu.vector_store %arg9[%c7, %c0_46], %200 {strides = array<i32>} : memref<8x128xf32, #tpu.memory_space<vmem>>, vector<1x128xf32>,
    %c0_47 = arith.constant 0 : index
    %c0_48 = arith.constant 0 : index
    %202 = vector.load %arg7[%c0_47, %c0_48] : memref<1x128xf32, #tpu.memory_space<vmem>>, vector<1x128xf32>
    tpu.vector_store %arg7[%c0_47, %c0_48], %200 {strides = array<i32>} : memref<1x128xf32, #tpu.memory_space<vmem>>, vector<1x128xf32>,
    %c0_49 = arith.constant 0 : index
    %c0_50 = arith.constant 0 : index
    %203 = vector.load %arg8[%c0_49, %c0_50] : memref<1x128xf32, #tpu.memory_space<vmem>>, vector<1x128xf32>
    tpu.vector_store %arg8[%c0_49, %c0_50], %198 {strides = array<i32>} : memref<1x128xf32, #tpu.memory_space<vmem>>, vector<1x128xf32>,
    %c0_51 = arith.constant 0 : index
    %c0_52 = arith.constant 0 : index
    %204 = vector.load %arg9[%c0_51, %c0_52] : memref<8x128xf32, #tpu.memory_space<vmem>>, vector<8x128xf32>
    %205 = arith.truncf %204 : vector<8x128xf32> to vector<8x128xbf16>
    %c128_53 = arith.constant 128 : index
    %c0_54 = arith.constant 0 : index
    %206 = vector.load %arg2[%c128_53, %c0_54] : memref<256x128xbf16, #tpu.memory_space<vmem>>, vector<128x128xbf16>
    %cst_55 = arith.constant dense<0.000000e+00> : vector<8x128xf32>
    %207 = tpu.matmul %205, %206, %cst_55 {dimension_numbers = #tpu.dot_dimension_numbers<[1], [0], [0], [1], [0, 0, 1, 1], [], []>} : vector<8x128xbf16>, vector<128x128xbf16>, vector<8x128xf32> -> vector<8x128xf32>
    %208 = vector.broadcast %3 : vector<1x128xf32> to vector<8x128xf32>
    %209 = arith.addf %207, %208 : vector<8x128xf32>
    %cst_56 = arith.constant 0.000000e+00 : f32
    %210 = vector.broadcast %cst_56 : f32 to vector<8x128xf32>
    %211 = arith.maximumf %209, %210 : vector<8x128xf32>
    %212 = arith.truncf %211 : vector<8x128xf32> to vector<8x128xbf16>
    %c0_57 = arith.constant 0 : index
    %c0_58 = arith.constant 0 : index
    %213 = vector.load %arg4[%c0_57, %c0_58] : memref<128x256xbf16, #tpu.memory_space<vmem>>, vector<128x256xbf16>
    %cst_59 = arith.constant dense<0.000000e+00> : vector<8x256xf32>
    %214 = tpu.matmul %212, %213, %cst_59 {dimension_numbers = #tpu.dot_dimension_numbers<[1], [0], [0], [1], [0, 0, 1, 1], [], []>} : vector<8x128xbf16>, vector<128x256xbf16>, vector<8x256xf32> -> vector<8x256xf32>
    %215 = vector.broadcast %4 : vector<1x256xf32> to vector<8x256xf32>
    %216 = arith.addf %214, %215 : vector<8x256xf32>
    %217 = arith.mulf %216, %216 : vector<8x256xf32>
    %cst_60 = arith.constant dense<0.000000e+00> : vector<8xf32>
    %218 = vector.multi_reduction <add>, %217, %cst_60 [1] : vector<8x256xf32> to vector<8xf32>
    %219 = vector.shape_cast %218 : vector<8xf32> to vector<8x1xf32>
    %cst_61 = arith.constant 1.000000e-24 : f32
    %220 = vector.broadcast %cst_61 : f32 to vector<8x1xf32>
    %221 = arith.maximumf %219, %220 : vector<8x1xf32>
    %222 = math.rsqrt %221 : vector<8x1xf32>
    %223 = vector.broadcast %222 : vector<8x1xf32> to vector<8x256xf32>
    %224 = arith.mulf %216, %223 : vector<8x256xf32>
    %225 = arith.addf %224, %13 : vector<8x256xf32>
    %c0_62 = arith.constant 0 : index
    %c0_63 = arith.constant 0 : index
    %226 = vector.load %arg6[%c0_62, %c0_63] : memref<8x256xf32, #tpu.memory_space<vmem>>, vector<8x256xf32>
    tpu.vector_store %arg6[%c0_62, %c0_63], %225 {strides = array<i32>} : memref<8x256xf32, #tpu.memory_space<vmem>>, vector<8x256xf32>,
    return
  }
}

</mosaic_0001>

<bundles_post_ra>
// kernel: combilstm_forward.1
= control target key start
LH: loop header
LB: loop body
LE: loop exit
PB: predicated region body
PF: predicated region fallthrough
CT: control target
= control target key end

     0   :  { %14 = vsyncpa [#allocation4], 0  ;;  %s3617_s0 = inlined_call_operand.hbm [shape: f32[8,256], index: 0, kind: input, shape index: {}]   ;;  %s3618_s1 = inlined_call_operand.hbm [shape: bf16[256,128], index: 1, kind: input, shape index: {}]   ;;  %s3619_s2 = inlined_call_operand.hbm [shape: bf16[256,128], index: 2, kind: input, shape index: {}]   ;;  %s3620_s3 = inlined_call_operand.hbm [shape: bf16[256,512], index: 3, kind: input, shape index: {}]   ;;  %s3621_s4 = inlined_call_operand.hbm [shape: bf16[128,256], index: 4, kind: input, shape index: {}]   ;;  %s3622_s5 = inlined_call_operand.hbm [shape: f32[1,1152], index: 5, kind: input, shape index: {}]   ;;  %s3623_s6 = inlined_call_operand.hbm [shape: f32[8,256], index: 6, kind: output, shape index: {0}]   ;;  %s3624_s7 = inlined_call_operand.hbm [shape: f32[1,128], index: 7, kind: output, shape index: {1}]   ;;  %s3625_s8 = inlined_call_operand.hbm [shape: f32[1,128], index: 8, kind: output, shape index: {2}]  }
   0x1   :  { %15 = vsyncpa [#allocation7], 0 }
   0x2   :  { %16 = vsyncpa [#allocation10], 0 }
   0x3   :  { %17 = vsyncpa [#allocation13], 0 }
   0x4   :  { %18 = vsyncpa [#allocation5], 0 }
   0x5   :  { %19 = vsyncpa [#allocation16], 0  ;;  %s3007_s27 = smov [#allocation6]   ;;  %s2797_s9 = scalar_lea.hbm %s3618_s1, 2048 }
   0x6   :  { %s35_s28 = sshll.u32 %s3007_s27, 4  ;;  %p2798_p0 = scmp.ne.s32.totalorder %s3618_s1, %s2797_s9  ;;  %s36_s28 = int_to_ptr.vmem [resolvable:$true] %s35_s28 }
   0x7   :  { %p2801_p1 = scmp.lt.u32.totalorder %s2797_s9, %s3618_s1 }
   0x9   :  { %p2803_p2 = pnand %p2801_p1, %p2798_p0 }
   0xb   :  { %2806 = shalt.err (!%p2803_p2)
}
   0xc   :  { %s2807_s14 = scalar_lea.vmem %s36_s28, 2048  ;;  %p2812_p4 = scmp.lt.s32.totalorder %s36_s28, %s36_s28 }
   0xd   :  { %p2808_p3 = scmp.ne.s32.totalorder %s36_s28, %s2807_s14  ;;  %p2813_p5 = scmp.lt.s32.totalorder %s2807_s14, %s2807_s14 }
   0xf   :  { %p2814_p6 = por %p2813_p5, %p2812_p4 }
  0x11   :  { %p2815_p7 = pnand %p2814_p6, %p2808_p3 }
  0x13   :  { %2818 = shalt.err (!%p2815_p7)
}
  0x14   :  { %s3008_s15 = smov 64   ;;  %s3009_s16 = smov 4  }
  0x15   :  { %41 = dma.hbm_to_vmem [thread:$0]  %s3618_s1, 2048, %s36_s28, [#allocation7], %s3008_s15, %s3008_s15, %s3009_s16  }
  0x16   :  { %s3010_s19 = smov [#allocation9]   ;;  %s2819_s23 = scalar_lea.hbm %s3620_s3, 8192 }
  0x17   :  { %s59_s20 = sshll.u32 %s3010_s19, 4  ;;  %p2820_p8 = scmp.ne.s32.totalorder %s3620_s3, %s2819_s23  ;;  %s60_s20 = int_to_ptr.vmem [resolvable:$true] %s59_s20 }
  0x18   :  { %p2823_p9 = scmp.lt.u32.totalorder %s2819_s23, %s3620_s3 }
  0x1a   :  { %p2825_p10 = pnand %p2823_p9, %p2820_p8 }
  0x1c   :  { %2828 = shalt.err (!%p2825_p10)
}
  0x1d   :  { %s2829_s29 = scalar_lea.vmem %s60_s20, 8192  ;;  %p2834_p12 = scmp.lt.s32.totalorder %s60_s20, %s60_s20 }
  0x1e   :  { %p2830_p11 = scmp.ne.s32.totalorder %s60_s20, %s2829_s29  ;;  %p2835_p13 = scmp.lt.s32.totalorder %s2829_s29, %s2829_s29 }
  0x20   :  { %p2836_p0 = por %p2835_p13, %p2834_p12 }
  0x22   :  { %p2837_p1 = pnand %p2836_p0, %p2830_p11 }
  0x24   :  { %2840 = shalt.err (!%p2837_p1)
}
  0x25   :  { %s3011_s1 = smov 256   ;;  %s3012_s28 = smov 16  }
  0x26   :  { %65 = dma.hbm_to_vmem [thread:$0]  %s3620_s3, 8192, %s60_s20, [#allocation10], %s3011_s1, %s3011_s1, %s3012_s28  }
  0x27   :  { %s3013_s10 = smov [#allocation3]   ;;  %s3014_s12 = smov [#allocation8]  }
  0x28   :  { %s26_s11 = sshll.u32 %s3013_s10, 4  ;;  %s47_s13 = sshll.u32 %s3014_s12, 4  ;;  %s27_s11 = int_to_ptr.vmem [resolvable:$true] %s26_s11  ;;  %s3097_s13 = int_to_ptr.vmem [resolvable:$true] %s47_s13 }
  0x29   :  { %s2841_s18 = scalar_lea.hbm %s3617_s0, 256 }
  0x2a   :  { %p2842_p2 = scmp.ne.s32.totalorder %s3617_s0, %s2841_s18  ;;  %p2845_p3 = scmp.lt.u32.totalorder %s2841_s18, %s3617_s0 }
  0x2c   :  { %p2847_p4 = pnand %p2845_p3, %p2842_p2 }
  0x2e   :  { %2850 = shalt.err (!%p2847_p4)
}
  0x2f   :  { %s2851_s3 = scalar_lea.vmem %s27_s11, 256  ;;  %p2856_p6 = scmp.lt.s32.totalorder %s27_s11, %s27_s11 }
  0x30   :  { %p2852_p5 = scmp.ne.s32.totalorder %s27_s11, %s2851_s3  ;;  %p2857_p7 = scmp.lt.s32.totalorder %s2851_s3, %s2851_s3 }
  0x32   :  { %p2858_p8 = por %p2857_p7, %p2856_p6 }
  0x34   :  { %p2859_p9 = pnand %p2858_p8, %p2852_p5 }
  0x36   :  { %2862 = shalt.err (!%p2859_p9)
}
  0x37   :  { %29 = dma.hbm_to_vmem [thread:$0]  %s3617_s0, 256, %s27_s11, [#allocation4]  }
  0x38   :  { %s2863_s27 = scalar_lea.hbm %s3619_s2, 2048 }
  0x39   :  { %p2864_p10 = scmp.ne.s32.totalorder %s3619_s2, %s2863_s27  ;;  %p2867_p11 = scmp.lt.u32.totalorder %s2863_s27, %s3619_s2 }
  0x3b   :  { %p2869_p12 = pnand %p2867_p11, %p2864_p10 }
  0x3d   :  { %2872 = shalt.err (!%p2869_p12)
}
  0x3e   :  { %s2873_s9 = scalar_lea.vmem %s3097_s13, 2048  ;;  %p2878_p0 = scmp.lt.s32.totalorder %s3097_s13, %s3097_s13 }
  0x3f   :  { %p2874_p13 = scmp.ne.s32.totalorder %s3097_s13, %s2873_s9  ;;  %p2879_p1 = scmp.lt.s32.totalorder %s2873_s9, %s2873_s9 }
  0x41   :  { %p2880_p2 = por %p2879_p1, %p2878_p0 }
  0x43   :  { %p2881_p3 = pnand %p2880_p2, %p2874_p13 }
  0x45   :  { %2884 = shalt.err (!%p2881_p3)
}
  0x46   :  { %53 = dma.hbm_to_vmem [thread:$0]  %s3619_s2, 2048, %s3097_s13, [#allocation7], %s3008_s15, %s3008_s15, %s3009_s16  }
  0x47   :  { %s3015_s11 = smov [#allocation11]   ;;  %s2885_s18 = scalar_lea.hbm %s3621_s4, 2048 }
  0x48   :  { %s71_s12 = sshll.u32 %s3015_s11, 4  ;;  %p2886_p4 = scmp.ne.s32.totalorder %s3621_s4, %s2885_s18  ;;  %s72_s12 = int_to_ptr.vmem [resolvable:$true] %s71_s12 }
  0x49   :  { %p2889_p5 = scmp.lt.u32.totalorder %s2885_s18, %s3621_s4 }
  0x4b   :  { %p2891_p6 = pnand %p2889_p5, %p2886_p4 }
  0x4d   :  { %2894 = shalt.err (!%p2891_p6)
}
  0x4e   :  { %s2895_s3 = scalar_lea.vmem %s72_s12, 2048  ;;  %p2900_p8 = scmp.lt.s32.totalorder %s72_s12, %s72_s12 }
  0x4f   :  { %p2896_p7 = scmp.ne.s32.totalorder %s72_s12, %s2895_s3  ;;  %p2901_p9 = scmp.lt.s32.totalorder %s2895_s3, %s2895_s3 }
  0x51   :  { %p2902_p10 = por %p2901_p9, %p2900_p8 }
  0x53   :  { %p2903_p11 = pnand %p2902_p10, %p2896_p7 }
  0x55   :  { %2906 = shalt.err (!%p2903_p11)
}
  0x56   :  { %s3016_s2 = smov 128   ;;  %s3017_s15 = smov 8  }
  0x57   :  { %77 = dma.hbm_to_vmem [thread:$0]  %s3621_s4, 2048, %s72_s12, [#allocation10], %s3016_s2, %s3016_s2, %s3017_s15  }
  0x58   :  { %s3018_s20 = smov [#allocation12]   ;;  %s2907_s27 = scalar_lea.hbm %s3622_s5, 144 }
  0x59   :  { %s84_s24 = sshll.u32 %s3018_s20, 4  ;;  %p2908_p12 = scmp.ne.s32.totalorder %s3622_s5, %s2907_s27  ;;  %s85_s24 = int_to_ptr.vmem [resolvable:$true] %s84_s24 }
  0x5a   :  { %p2911_p13 = scmp.lt.u32.totalorder %s2907_s27, %s3622_s5 }
  0x5c   :  { %p2913_p0 = pnand %p2911_p13, %p2908_p12 }
  0x5e   :  { %2916 = shalt.err (!%p2913_p0)
}
  0x5f   :  { %s2917_s9 = scalar_lea.vmem %s85_s24, 144  ;;  %s2921_s4 = scalar_lea.vmem %s85_s24, 160 }
  0x60   :  { %p2918_p1 = scmp.ne.s32.totalorder %s85_s24, %s2917_s9  ;;  %p2922_p2 = scmp.lt.s32.totalorder %s85_s24, %s85_s24 }
  0x61   :  { %p2923_p3 = scmp.lt.s32.totalorder %s2921_s4, %s2917_s9 }
  0x63   :  { %p2924_p4 = por %p2923_p3, %p2922_p2 }
  0x65   :  { %p2925_p5 = pnand %p2924_p4, %p2918_p1 }
  0x67   :  { %2928 = shalt.err (!%p2925_p5)
}
  0x68   :  { %87 = dma.hbm_to_vmem [thread:$0]  %s3622_s5, 144, %s85_s24, [#allocation13]  }
  0x69   :  { %2995 = dma.done.wait [#allocation4], 256  }
  0x6a   :  { %2996 = vsyncadd [#allocation4], 4294967040 }
  0x6b   :  { %2997 = dma.done.wait [#allocation7], 4096  }
  0x6c   :  { %2998 = vsyncadd [#allocation7], 4294963200 }
  0x6d   :  { %2999 = dma.done.wait [#allocation10], 10240  }
  0x6e   :  { %3000 = vsyncadd [#allocation10], 4294957056 }
  0x6f   :  { %3001 = dma.done.wait [#allocation13], 144  }
  0x70   :  { %3002 = vsyncadd [#allocation13], 4294967152  ;;  %v3155_v0 = vld [vmem:[#allocation3] sm:$0xff]  ;;  %v113_v1 = vld [vmem:[#allocation3 + $0x8] sm:$0xff]  ;;  %v3019_v22 = vmov 0.0   ;;  %vm3020_vm0 = vmmov 0  }
  0x71   :  { %v114_v2 = vmul.f32 %v3155_v0, %v3155_v0  ;;  %v115_v3 = vmul.f32 %v113_v1, %v113_v1  ;;  %v2481_v4 = vld [vmem:[#allocation6 + $0x40] sm:$0xff]   ;;  %v2483_v7 = vld [vmem:[#allocation6 + $0x48] sm:$0xff]   ;;  %v2485_v9 = vld [vmem:[#allocation6 + $0x50] sm:$0xff]   ;;  %2423 = vmatprep.subr.bf16.mxu1 %v3019_v22  ;;  %2439 = vmatprep.mubr.msk.bf16.mxu1 %vm3020_vm0, %v3019_v22  ;;  %s3022_s5 = smov [#allocation15]  }
  0x72   :  { %v2482_v5 = vld [vmem:[#allocation6] sm:$0xff]   ;;  %2383 = vmatprep.subr.bf16.mxu0 %v2481_v4  ;;  %v2484_v8 = vld [vmem:[#allocation6 + $0x8] sm:$0xff]   ;;  %v2486_v10 = vld [vmem:[#allocation6 + $0x10] sm:$0xff]   ;;  %s2215_s11 = sshll.u32 %s3022_s5, 4  ;;  %s2216_s11 = int_to_ptr.vmem [resolvable:$true] %s2215_s11 }
  0x73   :  { %v116_v6 = vadd.f32 %v115_v3, %v114_v2  ;;  %2384 = vmatpush3.bf16.msra.mxu0 %v2482_v5  ;;  %v2487_v11 = vld [vmem:[#allocation6 + $0x58] sm:$0xff]   ;;  %v2489_v13 = vld [vmem:[#allocation6 + $0x60] sm:$0xff]   ;;  %v2491_v15 = vld [vmem:[#allocation6 + $0x68] sm:$0xff]   ;;  %s2929_s12 = scalar_lea.vmem %s2216_s11, 16  ;;  %s2933_s14 = scalar_lea.vmem %s2216_s11, 32 }
  0x74   :  { %2385 = vmatprep.subr.bf16.mxu0 %v2483_v7  ;;  %v2488_v12 = vld [vmem:[#allocation6 + $0x18] sm:$0xff]   ;;  %v2490_v14 = vld [vmem:[#allocation6 + $0x20] sm:$0xff]   ;;  %v2492_v16 = vld [vmem:[#allocation6 + $0x28] sm:$0xff]   ;;  %p2930_p6 = scmp.ne.s32.totalorder %s2216_s11, %s2929_s12  ;;  %p2934_p7 = scmp.lt.s32.totalorder %s2216_s11, %s2216_s11 }
  0x75   :  { %117 = vadd.xlane.f32.xlu0 %v116_v6  ;;  %v2493_v17 = vld [vmem:[#allocation6 + $0x70] sm:$0xff]   ;;  %v2495_v19 = vld [vmem:[#allocation6 + $0x78] sm:$0xff]   ;;  %v2497_v21 = vld [vmem:[#allocation8] sm:$0xff]   ;;  %p2935_p8 = scmp.lt.s32.totalorder %s2933_s14, %s2929_s12 }
  0x76   :  { %v2494_v18 = vld [vmem:[#allocation6 + $0x30] sm:$0xff]   ;;  %v2496_v20 = vld [vmem:[#allocation6 + $0x38] sm:$0xff]   ;;  %v2498_v23 = vld [vmem:[#allocation8 + $0x8] sm:$0xff]   ;;  %2424 = vmatpush3.bf16.msra.mxu1 %v2497_v21 }
  0x77   :  { %2386 = vmatpush3.bf16.msra.mxu0 %v2484_v8  ;;  %2425 = vmatprep.subr.bf16.mxu1 %v3019_v22  ;;  %v2499_v24 = vld [vmem:[#allocation8 + $0x10] sm:$0xff]   ;;  %v2500_v25 = vld [vmem:[#allocation8 + $0x18] sm:$0xff]   ;;  %v2501_v26 = vld [vmem:[#allocation8 + $0x20] sm:$0xff]   ;;  %p2936_p9 = por %p2935_p8, %p2934_p7 }
  0x78   :  { %2387 = vmatprep.subr.bf16.mxu0 %v2485_v9  ;;  %v2502_v27 = vld [vmem:[#allocation8 + $0x28] sm:$0xff]   ;;  %v2503_v35 = vld [vmem:[#allocation8 + $0x30] sm:$0xff]   ;;  %v2504_v36 = vld [vmem:[#allocation8 + $0x38] sm:$0xff]  }
  0x79   :  { %v2505_v37 = vld [vmem:[#allocation9] ss:$16 sps:$4 sm:$0xff]   ;;  %v2507_v38 = vld [vmem:[#allocation9 + $0x4] ss:$16 sps:$4 sm:$0xff]   ;;  %v2510_v39 = vld [vmem:[#allocation9 + $0xc] ss:$16 sps:$4 sm:$0xff]   ;;  %p2937_p10 = pnand %p2936_p9, %p2930_p6 }
  0x7a   :  { %2426 = vmatpush3.bf16.msra.mxu1 %v2498_v23  ;;  %v2513_v40 = vld [vmem:[#allocation9 + $0x24] ss:$16 sps:$4 sm:$0xff]   ;;  %v2511_v41 = vld [vmem:[#allocation9 + $0x20] ss:$16 sps:$4 sm:$0xff]   ;;  %v2508_v60 = vld [vmem:[#allocation9 + $0x8] ss:$16 sps:$4 sm:$0xff]  }
  0x7b   :  { %2388 = vmatpush3.bf16.msra.mxu0 %v2486_v10  ;;  %2427 = vmatprep.subr.bf16.mxu1 %v3019_v22  ;;  %v2519_v42 = vld [vmem:[#allocation9 + $0x44] ss:$16 sps:$4 sm:$0xff]   ;;  %v2517_v43 = vld [vmem:[#allocation9 + $0x40] ss:$16 sps:$4 sm:$0xff]   ;;  %v2516_v62 = vld [vmem:[#allocation9 + $0x2c] ss:$16 sps:$4 sm:$0xff]  }
  0x7c   :  { %2389 = vmatprep.subr.bf16.mxu0 %v2487_v11  ;;  %v2525_v44 = vld [vmem:[#allocation9 + $0x64] ss:$16 sps:$4 sm:$0xff]   ;;  %v2523_v45 = vld [vmem:[#allocation9 + $0x60] ss:$16 sps:$4 sm:$0xff]   ;;  %v2514_v63 = vld [vmem:[#allocation9 + $0x28] ss:$16 sps:$4 sm:$0xff]  }
  0x7d   :  { %v2531_v46 = vld [vmem:[#allocation9 + $0x84] ss:$16 sps:$4 sm:$0xff]   ;;  %v2529_v47 = vld [vmem:[#allocation9 + $0x80] ss:$16 sps:$4 sm:$0xff]   ;;  %v2528_v2 = vld [vmem:[#allocation9 + $0x6c] ss:$16 sps:$4 sm:$0xff]  }
  0x7e   :  { %2428 = vmatpush3.bf16.msra.mxu1 %v2499_v24  ;;  %v2537_v48 = vld [vmem:[#allocation9 + $0xa4] ss:$16 sps:$4 sm:$0xff]   ;;  %v2535_v49 = vld [vmem:[#allocation9 + $0xa0] ss:$16 sps:$4 sm:$0xff]   ;;  %v2526_v3 = vld [vmem:[#allocation9 + $0x68] ss:$16 sps:$4 sm:$0xff]  }
  0x7f   :  { %2390 = vmatpush3.bf16.msra.mxu0 %v2488_v12  ;;  %2429 = vmatprep.subr.bf16.mxu1 %v3019_v22  ;;  %v2543_v50 = vld [vmem:[#allocation9 + $0xc4] ss:$16 sps:$4 sm:$0xff]   ;;  %v2541_v51 = vld [vmem:[#allocation9 + $0xc0] ss:$16 sps:$4 sm:$0xff]   ;;  %v2534_v4 = vld [vmem:[#allocation9 + $0x8c] ss:$16 sps:$4 sm:$0xff]  }
  0x80   :  { %2391 = vmatprep.subr.bf16.mxu0 %v2489_v13  ;;  %v2244_v53 = vld [vmem:[#allocation12] ss:$0 sm:$0xff]  ;;  %v2532_v5 = vld [vmem:[#allocation9 + $0x88] ss:$16 sps:$4 sm:$0xff]   ;;  %v2540_v6 = vld [vmem:[#allocation9 + $0xac] ss:$16 sps:$4 sm:$0xff]  }
  0x81   :  { %v2538_v7 = vld [vmem:[#allocation9 + $0xa8] ss:$16 sps:$4 sm:$0xff]   ;;  %v2546_v8 = vld [vmem:[#allocation9 + $0xcc] ss:$16 sps:$4 sm:$0xff]   ;;  %v2549_v10 = vld [vmem:[#allocation9 + $0xe4] ss:$16 sps:$4 sm:$0xff]  }
  0x82   :  { %2430 = vmatpush3.bf16.msra.mxu1 %v2500_v25  ;;  %v2544_v9 = vld [vmem:[#allocation9 + $0xc8] ss:$16 sps:$4 sm:$0xff]   ;;  %v2552_v11 = vld [vmem:[#allocation9 + $0xec] ss:$16 sps:$4 sm:$0xff]   ;;  %v2547_v12 = vld [vmem:[#allocation9 + $0xe0] ss:$16 sps:$4 sm:$0xff]  }
  0x83   :  { %2392 = vmatpush3.bf16.msra.mxu0 %v2490_v14  ;;  %2431 = vmatprep.subr.bf16.mxu1 %v3019_v22  ;;  %v2550_v13 = vld [vmem:[#allocation9 + $0xe8] ss:$16 sps:$4 sm:$0xff]   ;;  %v3178_v14 = vld [vmem:[#allocation9 + $0x104] ss:$16 sps:$4 sm:$0xff]   ;;  %v3186_v23 = vld [vmem:[#allocation9 + $0x100] ss:$16 sps:$4 sm:$0xff]  }
  0x84   :  { %2393 = vmatprep.subr.bf16.mxu0 %v2491_v15  ;;  %v3180_v15 = vld [vmem:[#allocation9 + $0x10c] ss:$16 sps:$4 sm:$0xff]   ;;  %v3188_v24 = vld [vmem:[#allocation9 + $0x108] ss:$16 sps:$4 sm:$0xff]  }
  0x86   :  { %2432 = vmatpush3.bf16.msra.mxu1 %v2501_v26 }
  0x87   :  { %2394 = vmatpush3.bf16.msra.mxu0 %v2492_v16  ;;  %2433 = vmatprep.subr.bf16.mxu1 %v3019_v22  ;;  %v3021_v16 = vmov 0  }
  0x88   :  { %2395 = vmatprep.subr.bf16.mxu0 %v2493_v17  ;;  %v2261_v17 = vld [vmem:[#allocation12 + $0x1] ss:$0 sm:$0xff] }
  0x8a   :  { %2434 = vmatpush3.bf16.msra.mxu1 %v2502_v27  ;;  %v3190_v27 = vld [vmem:[#allocation9 + $0x124] ss:$16 sps:$4 sm:$0xff]  }
  0x8b   :  { %2396 = vmatpush3.bf16.msra.mxu0 %v2494_v18  ;;  %2435 = vmatprep.subr.bf16.mxu1 %v3019_v22 }
  0x8c   :  { %2397 = vmatprep.subr.bf16.mxu0 %v2495_v19 }
  0x8e   :  { %2436 = vmatpush3.bf16.msra.mxu1 %v2503_v35  ;;  %v3210_v35 = vld [vmem:[#allocation9 + $0x140] ss:$16 sps:$4 sm:$0xff]  }
  0x8f   :  { %2398 = vmatpush3.bf16.msra.mxu0 %v2496_v20  ;;  %2437 = vmatprep.subr.bf16.mxu1 %v3019_v22 }
  0x90   :  { %625 = vmatprep.subr.bf16.mxu0 %v2507_v38  ;;  %v3218_v38 = vld [vmem:[#allocation9 + $0x16c] ss:$16 sps:$4 sm:$0xff]  }
  0x92   :  { %2438 = vmatpush3.bf16.msra.mxu1 %v2504_v36  ;;  %v3212_v36 = vld [vmem:[#allocation9 + $0x148] ss:$16 sps:$4 sm:$0xff]  }
  0x93   :  { %666 = vmatprep.subr.bf16.mxu1 %v2510_v39  ;;  %v3222_v39 = vld [vmem:[#allocation9 + $0x160] ss:$16 sps:$4 sm:$0xff]  }
 0x102   :  { %v118_v28 = vpop.xlane.xlu0 %117 }
 0x103   :  { %v119_v29 = vmax.f32 %v118_v28, 1e-24  ;;  %v3192_v28 = vld [vmem:[#allocation9 + $0x12c] ss:$16 sps:$4 sm:$0xff]  }
 0x105   :  { %2633 = vrsqrt.f32 %v119_v29  ;;  %v3196_v29 = vld [vmem:[#allocation9 + $0x120] ss:$16 sps:$4 sm:$0xff]  }
 0x10f   :  { %v2634_v30 = vpop.eup %2633 }
 0x110   :  { %v3166_v31 = vmul.f32 %v2634_v30, %v113_v1  ;;  %v3169_v32 = vmul.f32 %v2634_v30, %v3155_v0  ;;  %v2522_v0 = vld [vmem:[#allocation9 + $0x4c] ss:$16 sps:$4 sm:$0xff]   ;;  %v2520_v1 = vld [vmem:[#allocation9 + $0x48] ss:$16 sps:$4 sm:$0xff]  }
 0x111   :  { %v3198_v30 = vld [vmem:[#allocation9 + $0x128] ss:$16 sps:$4 sm:$0xff]  }
 0x112   :  { %v124_v33 = vpack.c.bf16 %v3166_v31, %v3166_v31  ;;  %v123_v34 = vpack.c.bf16 %v3169_v32, %v3169_v32 }
 0x114   :  { %291 = vmatprep.mubr.bf16.mxu0 %v124_v33  ;;  %v3202_v33 = vld [vmem:[#allocation9 + $0x144] ss:$16 sps:$4 sm:$0xff]  }
 0x115   :  { %292 = vmatmul.mubr.bf16.vlgmr.msra.gmra.mrb[0].mxu0 %v123_v34  ;;  %v3204_v34 = vld [vmem:[#allocation9 + $0x14c] ss:$16 sps:$4 sm:$0xff]  }
 0x116   :  { %626 = vmatpush1.bf16.msra.mxu0 %v2505_v37  ;;  %657 = vmatprep.mubr.bf16.mxu0 %v3021_v16  ;;  %v3216_v37 = vld [vmem:[#allocation9 + $0x164] ss:$16 sps:$4 sm:$0xff]  }
 0x117   :  { %627 = vmatprep.subr.bf16.mxu0 %v2513_v40  ;;  %v3224_v40 = vld [vmem:[#allocation9 + $0x168] ss:$16 sps:$4 sm:$0xff]  }
 0x11a   :  { %628 = vmatpush1.bf16.msra.mxu0 %v2511_v41  ;;  %v3228_v41 = vld [vmem:[#allocation9 + $0x184] ss:$16 sps:$4 sm:$0xff]  }
 0x11b   :  { %629 = vmatprep.subr.bf16.mxu0 %v2519_v42  ;;  %v3230_v42 = vld [vmem:[#allocation9 + $0x18c] ss:$16 sps:$4 sm:$0xff]  }
 0x11e   :  { %630 = vmatpush1.bf16.msra.mxu0 %v2517_v43  ;;  %v3234_v43 = vld [vmem:[#allocation9 + $0x180] ss:$16 sps:$4 sm:$0xff]  }
 0x11f   :  { %631 = vmatprep.subr.bf16.mxu0 %v2525_v44  ;;  %v3236_v44 = vld [vmem:[#allocation9 + $0x188] ss:$16 sps:$4 sm:$0xff]  }
 0x122   :  { %632 = vmatpush1.bf16.msra.mxu0 %v2523_v45  ;;  %v3240_v45 = vld [vmem:[#allocation9 + $0x1a4] ss:$16 sps:$4 sm:$0xff]  }
 0x123   :  { %633 = vmatprep.subr.bf16.mxu0 %v2531_v46  ;;  %v3242_v46 = vld [vmem:[#allocation9 + $0x1ac] ss:$16 sps:$4 sm:$0xff]  }
 0x126   :  { %634 = vmatpush1.bf16.msra.mxu0 %v2529_v47  ;;  %v3246_v47 = vld [vmem:[#allocation9 + $0x1a0] ss:$16 sps:$4 sm:$0xff]  }
 0x127   :  { %635 = vmatprep.subr.bf16.mxu0 %v2537_v48  ;;  %v3248_v48 = vld [vmem:[#allocation9 + $0x1a8] ss:$16 sps:$4 sm:$0xff]  }
 0x12a   :  { %636 = vmatpush1.bf16.msra.mxu0 %v2535_v49  ;;  %v3252_v49 = vld [vmem:[#allocation9 + $0x1c4] ss:$16 sps:$4 sm:$0xff]  }
 0x12b   :  { %637 = vmatprep.subr.bf16.mxu0 %v2543_v50  ;;  %v3254_v50 = vld [vmem:[#allocation9 + $0x1cc] ss:$16 sps:$4 sm:$0xff]  }
 0x12e   :  { %638 = vmatpush1.bf16.msra.mxu0 %v2541_v51  ;;  %v3258_v51 = vld [vmem:[#allocation9 + $0x1c0] ss:$16 sps:$4 sm:$0xff]  }
 0x12f   :  { %639 = vmatprep.subr.bf16.mxu0 %v2549_v10 }
 0x132   :  { %640 = vmatpush1.bf16.msra.mxu0 %v2547_v12 }
 0x133   :  { %899 = vmatprep.subr.bf16.mxu0 %v3178_v14 }
 0x1e8   :  { %v2399_v52 = vpop.f32.mrb[0].mxu0 }
 0x1e9   :  { %v2400_v54 = vpop.f32.mrb[1].mxu0 }
 0x1ea   :  { %v2401_v55 = vadd.f32 %v2400_v54, %v2399_v52  ;;  %v2402_v56 = vpop.f32.mrb[2].mxu0  ;;  %v3260_v52 = vld [vmem:[#allocation9 + $0x1c8] ss:$16 sps:$4 sm:$0xff]   ;;  %v3266_v54 = vld [vmem:[#allocation9 + $0x1ec] ss:$16 sps:$4 sm:$0xff]  }
 0x1eb   :  { %v2403_v57 = vpop.f32.mrb[3].mxu0  ;;  %v3272_v56 = vld [vmem:[#allocation9 + $0x1e8] ss:$16 sps:$4 sm:$0xff]  }
 0x1ec   :  { %v294_v58 = vadd.f32 %v2401_v55, %v2244_v53  ;;  %v3264_v53 = vld [vmem:[#allocation9 + $0x1e4] ss:$16 sps:$4 sm:$0xff]   ;;  %v3270_v55 = vld [vmem:[#allocation9 + $0x1e0] ss:$16 sps:$4 sm:$0xff]  }
 0x1ee   :  { %v299_v59 = vmax.f32 %v294_v58, 0.0 }
 0x1f0   :  { %v300_v61 = vpack.c.bf16 %v299_v59, %v299_v59 }
 0x1f2   :  { %2440 = vmatmul.mubr.bf16.vlgmr.msra.gmra.mrb[0].mxu1 %v300_v61 }
 0x1f3   :  { %667 = vmatpush1.bf16.msra.mxu1 %v2508_v60  ;;  %698 = vmatprep.mubr.bf16.mxu1 %v3021_v16 }
 0x1f4   :  { %668 = vmatprep.subr.bf16.mxu1 %v2516_v62 }
 0x1f7   :  { %669 = vmatpush1.bf16.msra.mxu1 %v2514_v63 }
 0x1f8   :  { %670 = vmatprep.subr.bf16.mxu1 %v2522_v0 }
 0x1fb   :  { %671 = vmatpush1.bf16.msra.mxu1 %v2520_v1  ;;  %v445_v1 = vlaneseq }
 0x1fc   :  { %672 = vmatprep.subr.bf16.mxu1 %v2528_v2 }
 0x1fd   :  { %v3316_v2 = vshrl.u32 %v445_v1, 7 }
 0x1ff   :  { %673 = vmatpush1.bf16.msra.mxu1 %v2526_v3  ;;  %v447_v3 = vsub.s32 0, %v3316_v2 }
 0x200   :  { %674 = vmatprep.subr.bf16.mxu1 %v2534_v4  ;;  %v109_v4 = vld [vmem:[#allocation12 + $0x2] sm:$0xf] }
 0x203   :  { %675 = vmatpush1.bf16.msra.mxu1 %v2532_v5  ;;  %v451_v5 = vsub.s32 1, %v3316_v2 }
 0x204   :  { %676 = vmatprep.subr.bf16.mxu1 %v2540_v6  ;;  %v448_v6 = vrot.slane %v109_v4, %v447_v3 }
 0x207   :  { %677 = vmatpush1.bf16.msra.mxu1 %v2538_v7  ;;  %v452_v7 = vrot.slane %v109_v4, %v451_v5 }
 0x208   :  { %678 = vmatprep.subr.bf16.mxu1 %v2546_v8 }
 0x20b   :  { %679 = vmatpush1.bf16.msra.mxu1 %v2544_v9  ;;  %v455_v9 = vsub.s32 2, %v3316_v2 }
 0x20c   :  { %680 = vmatprep.subr.bf16.mxu1 %v2552_v11 }
 0x20f   :  { %681 = vmatpush1.bf16.msra.mxu1 %v2550_v13 }
 0x210   :  { %940 = vmatprep.subr.bf16.mxu1 %v3180_v15 }
 0x2c5   :  { %v405_v18 = vpop.f32.mrb[0].mxu1 }
 0x2c6   :  { %v406_v19 = vadd.f32 %v2261_v17, %v405_v18  ;;  %v2441_v20 = vpop.f32.mrb[1].mxu1 }
 0x2c7   :  { %v408_v21 = vpop.f32.mrb[2].mxu1 }
 0x2c8   :  { %v411_v25 = vpack.c.bf16 %v406_v19, %v406_v19  ;;  %v2442_v26 = vpop.f32.mrb[3].mxu1  ;;  %v459_v19 = vsub.s32 3, %v3316_v2 }
 0x2c9   :  { %v456_v26 = vrot.slane %v109_v4, %v455_v9 }
 0x2ca   :  { %658 = vmatmul.mubr.bf16.vlgmr.msra.gmra.mrb[4].mxu0 %v411_v25  ;;  %699 = vmatmul.mubr.bf16.vlgmr.msra.gmra.mrb[4].mxu1 %v411_v25 }
 0x2cb   :  { %900 = vmatpush1.bf16.msra.mxu0 %v3186_v23  ;;  %941 = vmatpush1.bf16.msra.mxu1 %v3188_v24 }
 0x2cc   :  { %901 = vmatprep.subr.bf16.mxu0 %v3190_v27  ;;  %942 = vmatprep.subr.bf16.mxu1 %v3192_v28 }
 0x2cd   :  { %931 = vmatprep.mubr.bf16.mxu0 %v3021_v16  ;;  %972 = vmatprep.mubr.bf16.mxu1 %v3021_v16 }
 0x2cf   :  { %902 = vmatpush1.bf16.msra.mxu0 %v3196_v29  ;;  %943 = vmatpush1.bf16.msra.mxu1 %v3198_v30 }
 0x2d0   :  { %903 = vmatprep.subr.bf16.mxu0 %v3202_v33  ;;  %944 = vmatprep.subr.bf16.mxu1 %v3204_v34 }
 0x2d3   :  { %904 = vmatpush1.bf16.msra.mxu0 %v3210_v35  ;;  %945 = vmatpush1.bf16.msra.mxu1 %v3212_v36 }
 0x2d4   :  { %905 = vmatprep.subr.bf16.mxu0 %v3216_v37  ;;  %946 = vmatprep.subr.bf16.mxu1 %v3218_v38 }
 0x2d7   :  { %906 = vmatpush1.bf16.msra.mxu0 %v3222_v39  ;;  %947 = vmatpush1.bf16.msra.mxu1 %v3224_v40 }
 0x2d8   :  { %907 = vmatprep.subr.bf16.mxu0 %v3228_v41  ;;  %948 = vmatprep.subr.bf16.mxu1 %v3230_v42 }
 0x2db   :  { %908 = vmatpush1.bf16.msra.mxu0 %v3234_v43  ;;  %949 = vmatpush1.bf16.msra.mxu1 %v3236_v44 }
 0x2dc   :  { %909 = vmatprep.subr.bf16.mxu0 %v3240_v45  ;;  %950 = vmatprep.subr.bf16.mxu1 %v3242_v46 }
 0x2df   :  { %910 = vmatpush1.bf16.msra.mxu0 %v3246_v47  ;;  %951 = vmatpush1.bf16.msra.mxu1 %v3248_v48 }
 0x2e0   :  { %911 = vmatprep.subr.bf16.mxu0 %v3252_v49  ;;  %952 = vmatprep.subr.bf16.mxu1 %v3254_v50 }
 0x2e3   :  { %912 = vmatpush1.bf16.msra.mxu0 %v3258_v51  ;;  %953 = vmatpush1.bf16.msra.mxu1 %v3260_v52 }
 0x2e4   :  { %913 = vmatprep.subr.bf16.mxu0 %v3264_v53  ;;  %954 = vmatprep.subr.bf16.mxu1 %v3266_v54 }
 0x2e7   :  { %914 = vmatpush1.bf16.msra.mxu0 %v3270_v55  ;;  %955 = vmatpush1.bf16.msra.mxu1 %v3272_v56 }
 0x2e8   :  { %1011 = vmatprep.subr.bf16.mxu0 %v3178_v14  ;;  %1052 = vmatprep.subr.bf16.mxu1 %v3180_v15 }
 0x2ea   :  { %932 = vmatmul.mubr.bf16.vlgmr.msra.gmra.mrb[8].mxu0 %v3021_v16  ;;  %973 = vmatmul.mubr.bf16.vlgmr.msra.gmra.mrb[8].mxu1 %v3021_v16 }
 0x2eb   :  { %1012 = vmatpush1.bf16.msra.mxu0 %v3186_v23  ;;  %1053 = vmatpush1.bf16.msra.mxu1 %v3188_v24 }
 0x2ec   :  { %1013 = vmatprep.subr.bf16.mxu0 %v3190_v27  ;;  %1054 = vmatprep.subr.bf16.mxu1 %v3192_v28 }
 0x2ed   :  { %1043 = vmatprep.mubr.bf16.mxu0 %v3021_v16  ;;  %1084 = vmatprep.mubr.bf16.mxu1 %v3021_v16 }
 0x2ef   :  { %1014 = vmatpush1.bf16.msra.mxu0 %v3196_v29  ;;  %1055 = vmatpush1.bf16.msra.mxu1 %v3198_v30 }
 0x2f0   :  { %1015 = vmatprep.subr.bf16.mxu0 %v3202_v33  ;;  %1056 = vmatprep.subr.bf16.mxu1 %v3204_v34 }
 0x2f3   :  { %1016 = vmatpush1.bf16.msra.mxu0 %v3210_v35  ;;  %1057 = vmatpush1.bf16.msra.mxu1 %v3212_v36 }
 0x2f4   :  { %1017 = vmatprep.subr.bf16.mxu0 %v3216_v37  ;;  %1058 = vmatprep.subr.bf16.mxu1 %v3218_v38 }
 0x2f7   :  { %1018 = vmatpush1.bf16.msra.mxu0 %v3222_v39  ;;  %1059 = vmatpush1.bf16.msra.mxu1 %v3224_v40 }
 0x2f8   :  { %1019 = vmatprep.subr.bf16.mxu0 %v3228_v41  ;;  %1060 = vmatprep.subr.bf16.mxu1 %v3230_v42 }
 0x2fb   :  { %1020 = vmatpush1.bf16.msra.mxu0 %v3234_v43  ;;  %1061 = vmatpush1.bf16.msra.mxu1 %v3236_v44 }
 0x2fc   :  { %1021 = vmatprep.subr.bf16.mxu0 %v3240_v45  ;;  %1062 = vmatprep.subr.bf16.mxu1 %v3242_v46 }
 0x2ff   :  { %1022 = vmatpush1.bf16.msra.mxu0 %v3246_v47  ;;  %1063 = vmatpush1.bf16.msra.mxu1 %v3248_v48 }
 0x300   :  { %1023 = vmatprep.subr.bf16.mxu0 %v3252_v49  ;;  %1064 = vmatprep.subr.bf16.mxu1 %v3254_v50 }
 0x303   :  { %1024 = vmatpush1.bf16.msra.mxu0 %v3258_v51  ;;  %1065 = vmatpush1.bf16.msra.mxu1 %v3260_v52 }
 0x304   :  { %1025 = vmatprep.subr.bf16.mxu0 %v3264_v53  ;;  %1066 = vmatprep.subr.bf16.mxu1 %v3266_v54 }
 0x307   :  { %1026 = vmatpush1.bf16.msra.mxu0 %v3270_v55  ;;  %1067 = vmatpush1.bf16.msra.mxu1 %v3272_v56 }
 0x308   :  { %1142 = vmatprep.subr.bf16.mxu0 %v3178_v14  ;;  %1183 = vmatprep.subr.bf16.mxu1 %v3180_v15 }
 0x39d   :  { %v659_v57 = vpop.f32.mrb[4].mxu0  ;;  %v700_v58 = vpop.f32.mrb[4].mxu1 }
 0x39e   :  { %v661_v59 = vpop.f32.mrb[5].mxu0  ;;  %v702_v60 = vpop.f32.mrb[5].mxu1  ;;  %v3324_v8 = vadd.f32 %v659_v57, %v448_v6 }
 0x39f   :  { %v663_v61 = vpop.f32.mrb[6].mxu0  ;;  %v704_v62 = vpop.f32.mrb[6].mxu1  ;;  %v3327_v10 = vadd.f32 %v661_v59, %v452_v7  ;;  %v460_v59 = vrot.slane %v109_v4, %v459_v19 }
 0x3a0   :  { %v664_v63 = vpop.f32.mrb[7].mxu0  ;;  %v705_v0 = vpop.f32.mrb[7].mxu1 }
 0x3a1   :  { %v3332_v0 = vadd.f32 %v700_v58, %v456_v26  ;;  %v3335_v6 = vadd.f32 %v702_v60, %v460_v59 }
 0x3bd   :  { %v933_v11 = vpop.f32.mrb[8].mxu0  ;;  %v974_v12 = vpop.f32.mrb[8].mxu1 }
 0x3be   :  { %v981_v13 = vadd.f32 %v933_v11, %v3324_v8  ;;  %v935_v17 = vpop.f32.mrb[9].mxu0  ;;  %v976_v18 = vpop.f32.mrb[9].mxu1  ;;  %v983_v1 = vadd.f32 %v974_v12, %v3332_v0 }
 0x3bf   :  { %v982_v20 = vadd.f32 %v935_v17, %v3327_v10  ;;  %v937_v21 = vpop.f32.mrb[10].mxu0  ;;  %v978_v25 = vpop.f32.mrb[10].mxu1  ;;  %v984_v7 = vadd.f32 %v976_v18, %v3335_v6 }
 0x3c0   :  { %v2334_v61 = vmul.f32 -1.442695, %v981_v13  ;;  %v938_v57 = vpop.f32.mrb[11].mxu0  ;;  %v979_v62 = vpop.f32.mrb[11].mxu1  ;;  %v2336_v11 = vmul.f32 -1.442695, %v983_v1 }
 0x3c1   :  { %v2335_v63 = vmul.f32 -1.442695, %v982_v20 }
 0x3c2   :  { %2635 = vpow2.f32 %v2334_v61 }
 0x3c3   :  { %2637 = vpow2.f32 %v2335_v63 }
 0x3c4   :  { %2639 = vtanh.f32 %v984_v7 }
 0x3c5   :  { %2641 = vpow2.f32 %v2336_v11 }
 0x3cc   :  { %v2636_v17 = vpop.eup %2635 }
 0x3cd   :  { %v994_v21 = vadd.f32 1.0, %v2636_v17  ;;  %v2638_v9 = vpop.eup %2637 }
 0x3ce   :  { %v995_v13 = vadd.f32 1.0, %v2638_v9  ;;  %v2640_v20 = vpop.eup %2639 }
 0x3cf   :  { %2643 = vrcp.f32 %v994_v21  ;;  %v2642_v4 = vpop.eup %2641 }
 0x3d0   :  { %2645 = vrcp.f32 %v995_v13  ;;  %v996_v26 = vadd.f32 1.0, %v2642_v4 }
 0x3d2   :  { %2647 = vrcp.f32 %v996_v26 }
 0x3d9   :  { %v2644_v58 = vpop.eup %2643 }
 0x3da   :  { %v1005_v19 = vmul.f32 %v2644_v58, %v2640_v20  ;;  %v2646_v25 = vpop.eup %2645 }
 0x3db   :  { %v1004_v12 = vmul.f32 0.0, %v2646_v25 }
 0x3dc   :  { %v2648_v18 = vpop.eup %2647 }
 0x3dd   :  { %v3338_v60 = vadd.f32 %v1005_v19, %v1004_v12 }
 0x3df   :  { %2649 = vtanh.f32 %v3338_v60 }
 0x3e9   :  { %v2650_v61 = vpop.eup %2649 }
 0x3ea   :  { %v1008_v57 = vmul.f32 %v2650_v61, %v2648_v18 }
 0x3ec   :  { %1009 = vst [vmem:[#allocation2] sm:$0x1] %v1008_v57  ;;  %v1010_v62 = vpack.c.bf16 %v1008_v57, %v1008_v57 }
 0x3ee   :  { %1044 = vmatmul.mubr.bf16.vlgmr.msra.gmra.mrb[12].mxu0 %v1010_v62  ;;  %1085 = vmatmul.mubr.bf16.vlgmr.msra.gmra.mrb[12].mxu1 %v1010_v62 }
 0x3ef   :  { %1143 = vmatpush1.bf16.msra.mxu0 %v3186_v23  ;;  %1184 = vmatpush1.bf16.msra.mxu1 %v3188_v24 }
 0x3f0   :  { %1144 = vmatprep.subr.bf16.mxu0 %v3190_v27  ;;  %1185 = vmatprep.subr.bf16.mxu1 %v3192_v28 }
 0x3f1   :  { %1174 = vmatprep.mubr.bf16.mxu0 %v3021_v16  ;;  %1215 = vmatprep.mubr.bf16.mxu1 %v3021_v16 }
 0x3f3   :  { %1145 = vmatpush1.bf16.msra.mxu0 %v3196_v29  ;;  %1186 = vmatpush1.bf16.msra.mxu1 %v3198_v30 }
 0x3f4   :  { %1146 = vmatprep.subr.bf16.mxu0 %v3202_v33  ;;  %1187 = vmatprep.subr.bf16.mxu1 %v3204_v34 }
 0x3f7   :  { %1147 = vmatpush1.bf16.msra.mxu0 %v3210_v35  ;;  %1188 = vmatpush1.bf16.msra.mxu1 %v3212_v36 }
 0x3f8   :  { %1148 = vmatprep.subr.bf16.mxu0 %v3216_v37  ;;  %1189 = vmatprep.subr.bf16.mxu1 %v3218_v38 }
 0x3fb   :  { %1149 = vmatpush1.bf16.msra.mxu0 %v3222_v39  ;;  %1190 = vmatpush1.bf16.msra.mxu1 %v3224_v40 }
 0x3fc   :  { %1150 = vmatprep.subr.bf16.mxu0 %v3228_v41  ;;  %1191 = vmatprep.subr.bf16.mxu1 %v3230_v42 }
 0x3ff   :  { %1151 = vmatpush1.bf16.msra.mxu0 %v3234_v43  ;;  %1192 = vmatpush1.bf16.msra.mxu1 %v3236_v44 }
 0x400   :  { %1152 = vmatprep.subr.bf16.mxu0 %v3240_v45  ;;  %1193 = vmatprep.subr.bf16.mxu1 %v3242_v46 }
 0x403   :  { %1153 = vmatpush1.bf16.msra.mxu0 %v3246_v47  ;;  %1194 = vmatpush1.bf16.msra.mxu1 %v3248_v48 }
 0x404   :  { %1154 = vmatprep.subr.bf16.mxu0 %v3252_v49  ;;  %1195 = vmatprep.subr.bf16.mxu1 %v3254_v50 }
 0x407   :  { %1155 = vmatpush1.bf16.msra.mxu0 %v3258_v51  ;;  %1196 = vmatpush1.bf16.msra.mxu1 %v3260_v52 }
 0x408   :  { %1156 = vmatprep.subr.bf16.mxu0 %v3264_v53  ;;  %1197 = vmatprep.subr.bf16.mxu1 %v3266_v54 }
 0x40b   :  { %1157 = vmatpush1.bf16.msra.mxu0 %v3270_v55  ;;  %1198 = vmatpush1.bf16.msra.mxu1 %v3272_v56 }
 0x40c   :  { %1272 = vmatprep.subr.bf16.mxu0 %v3178_v14  ;;  %1313 = vmatprep.subr.bf16.mxu1 %v3180_v15 }
 0x4c1   :  { %v1045_v63 = vpop.f32.mrb[12].mxu0  ;;  %v1086_v59 = vpop.f32.mrb[12].mxu1 }
 0x4c2   :  { %v1097_v1 = vrot.slane %v1045_v63, 7  ;;  %v1047_v7 = vpop.f32.mrb[13].mxu0  ;;  %v1088_v11 = vpop.f32.mrb[13].mxu1  ;;  %v1099_v26 = vrot.slane %v1086_v59, 7  ;;  %v1129_v59 = vrot.slane %v3338_v60, 7 }
 0x4c3   :  { %v1098_v17 = vrot.slane %v1047_v7, 7  ;;  %v1049_v21 = vpop.f32.mrb[14].mxu0  ;;  %v1090_v9 = vpop.f32.mrb[14].mxu1  ;;  %v1100_v12 = vrot.slane %v1088_v11, 7 }
 0x4c4   :  { %v1105_v13 = vadd.f32 %v1097_v1, %v3324_v8  ;;  %v1050_v20 = vpop.f32.mrb[15].mxu0  ;;  %v1091_v4 = vpop.f32.mrb[15].mxu1  ;;  %v1107_v18 = vadd.f32 %v1099_v26, %v3332_v0 }
 0x4c5   :  { %v1106_v58 = vadd.f32 %v1098_v17, %v3327_v10  ;;  %v1108_v61 = vadd.f32 %v1100_v12, %v3335_v6 }
 0x4c6   :  { %v2337_v19 = vmul.f32 -1.442695, %v1105_v13  ;;  %v2339_v57 = vmul.f32 -1.442695, %v1107_v18 }
 0x4c7   :  { %v2338_v25 = vmul.f32 -1.442695, %v1106_v58 }
 0x4c8   :  { %2651 = vpow2.f32 %v2337_v19 }
 0x4c9   :  { %2653 = vpow2.f32 %v2338_v25 }
 0x4ca   :  { %2655 = vtanh.f32 %v1108_v61 }
 0x4cb   :  { %2657 = vpow2.f32 %v2339_v57 }
 0x4d2   :  { %v2652_v62 = vpop.eup %2651 }
 0x4d3   :  { %v1118_v63 = vadd.f32 1.0, %v2652_v62  ;;  %v2654_v7 = vpop.eup %2653 }
 0x4d4   :  { %v1119_v1 = vadd.f32 1.0, %v2654_v7  ;;  %v2656_v17 = vpop.eup %2655 }
 0x4d5   :  { %2659 = vrcp.f32 %v1118_v63  ;;  %v2658_v21 = vpop.eup %2657 }
 0x4d6   :  { %2661 = vrcp.f32 %v1119_v1  ;;  %v1120_v20 = vadd.f32 1.0, %v2658_v21 }
 0x4d8   :  { %2663 = vrcp.f32 %v1120_v20 }
 0x4df   :  { %v2660_v9 = vpop.eup %2659 }
 0x4e0   :  { %v1132_v13 = vmul.f32 %v2660_v9, %v2656_v17  ;;  %v2662_v11 = vpop.eup %2661 }
 0x4e1   :  { %v1131_v4 = vmul.f32 %v2662_v11, %v1129_v59 }
 0x4e2   :  { %v2664_v19 = vpop.eup %2663 }
 0x4e3   :  { %v3380_v58 = vadd.f32 %v1132_v13, %v1131_v4 }
 0x4e5   :  { %2665 = vtanh.f32 %v3380_v58 }
 0x4ef   :  { %v2666_v25 = vpop.eup %2665 }
 0x4f0   :  { %v1135_v26 = vmul.f32 %v2666_v25, %v2664_v19 }
 0x4f2   :  { %1136 = vst [vmem:[#allocation2] sm:$0x2] %v1135_v26  ;;  %v1137_v12 = vpack.c.bf16 %v1135_v26, %v1135_v26 }
 0x4f4   :  { %v1139_v18 = vshrl.u32 %v1137_v12, 16 }
 0x4f6   :  { %1175 = vmatmul.mubr.bf16.vlgmr.msra.gmra.mrb[16].mxu0 %v1139_v18  ;;  %1216 = vmatmul.mubr.bf16.vlgmr.msra.gmra.mrb[16].mxu1 %v1139_v18 }
 0x4f7   :  { %1273 = vmatpush1.bf16.msra.mxu0 %v3186_v23  ;;  %1314 = vmatpush1.bf16.msra.mxu1 %v3188_v24 }
 0x4f8   :  { %1274 = vmatprep.subr.bf16.mxu0 %v3190_v27  ;;  %1315 = vmatprep.subr.bf16.mxu1 %v3192_v28 }
 0x4f9   :  { %1304 = vmatprep.mubr.bf16.mxu0 %v3021_v16  ;;  %1345 = vmatprep.mubr.bf16.mxu1 %v3021_v16 }
 0x4fb   :  { %1275 = vmatpush1.bf16.msra.mxu0 %v3196_v29  ;;  %1316 = vmatpush1.bf16.msra.mxu1 %v3198_v30 }
 0x4fc   :  { %1276 = vmatprep.subr.bf16.mxu0 %v3202_v33  ;;  %1317 = vmatprep.subr.bf16.mxu1 %v3204_v34 }
 0x4ff   :  { %1277 = vmatpush1.bf16.msra.mxu0 %v3210_v35  ;;  %1318 = vmatpush1.bf16.msra.mxu1 %v3212_v36 }
 0x500   :  { %1278 = vmatprep.subr.bf16.mxu0 %v3216_v37  ;;  %1319 = vmatprep.subr.bf16.mxu1 %v3218_v38 }
 0x503   :  { %1279 = vmatpush1.bf16.msra.mxu0 %v3222_v39  ;;  %1320 = vmatpush1.bf16.msra.mxu1 %v3224_v40 }
 0x504   :  { %1280 = vmatprep.subr.bf16.mxu0 %v3228_v41  ;;  %1321 = vmatprep.subr.bf16.mxu1 %v3230_v42 }
 0x507   :  { %1281 = vmatpush1.bf16.msra.mxu0 %v3234_v43  ;;  %1322 = vmatpush1.bf16.msra.mxu1 %v3236_v44 }
 0x508   :  { %1282 = vmatprep.subr.bf16.mxu0 %v3240_v45  ;;  %1323 = vmatprep.subr.bf16.mxu1 %v3242_v46 }
 0x50b   :  { %1283 = vmatpush1.bf16.msra.mxu0 %v3246_v47  ;;  %1324 = vmatpush1.bf16.msra.mxu1 %v3248_v48 }
 0x50c   :  { %1284 = vmatprep.subr.bf16.mxu0 %v3252_v49  ;;  %1325 = vmatprep.subr.bf16.mxu1 %v3254_v50 }
 0x50f   :  { %1285 = vmatpush1.bf16.msra.mxu0 %v3258_v51  ;;  %1326 = vmatpush1.bf16.msra.mxu1 %v3260_v52 }
 0x510   :  { %1286 = vmatprep.subr.bf16.mxu0 %v3264_v53  ;;  %1327 = vmatprep.subr.bf16.mxu1 %v3266_v54 }
 0x513   :  { %1287 = vmatpush1.bf16.msra.mxu0 %v3270_v55  ;;  %1328 = vmatpush1.bf16.msra.mxu1 %v3272_v56 }
 0x514   :  { %1404 = vmatprep.subr.bf16.mxu0 %v3178_v14  ;;  %1445 = vmatprep.subr.bf16.mxu1 %v3180_v15 }
 0x5c9   :  { %v1176_v60 = vpop.f32.mrb[16].mxu0  ;;  %v1217_v61 = vpop.f32.mrb[16].mxu1 }
 0x5ca   :  { %v1228_v57 = vrot.slane %v1176_v60, 6  ;;  %v1178_v62 = vpop.f32.mrb[17].mxu0  ;;  %v1219_v63 = vpop.f32.mrb[17].mxu1  ;;  %v1230_v4 = vrot.slane %v1217_v61, 6  ;;  %v1260_v61 = vrot.slane %v3380_v58, 7 }
 0x5cb   :  { %v1229_v7 = vrot.slane %v1178_v62, 6  ;;  %v1180_v1 = vpop.f32.mrb[18].mxu0  ;;  %v1221_v17 = vpop.f32.mrb[18].mxu1  ;;  %v1231_v19 = vrot.slane %v1219_v63, 6 }
 0x5cc   :  { %v1236_v21 = vadd.f32 %v1228_v57, %v3324_v8  ;;  %v1181_v9 = vpop.f32.mrb[19].mxu0  ;;  %v1222_v59 = vpop.f32.mrb[19].mxu1  ;;  %v1238_v25 = vadd.f32 %v1230_v4, %v3332_v0 }
 0x5cd   :  { %v1237_v13 = vadd.f32 %v1229_v7, %v3327_v10  ;;  %v1239_v26 = vadd.f32 %v1231_v19, %v3335_v6 }
 0x5ce   :  { %v2340_v11 = vmul.f32 -1.442695, %v1236_v21  ;;  %v2342_v12 = vmul.f32 -1.442695, %v1238_v25 }
 0x5cf   :  { %v2341_v20 = vmul.f32 -1.442695, %v1237_v13 }
 0x5d0   :  { %2667 = vpow2.f32 %v2340_v11 }
 0x5d1   :  { %2669 = vpow2.f32 %v2341_v20 }
 0x5d2   :  { %2671 = vtanh.f32 %v1239_v26 }
 0x5d3   :  { %2673 = vpow2.f32 %v2342_v12 }
 0x5da   :  { %v2668_v18 = vpop.eup %2667 }
 0x5db   :  { %v1249_v60 = vadd.f32 1.0, %v2668_v18  ;;  %v2670_v62 = vpop.eup %2669 }
 0x5dc   :  { %v1250_v57 = vadd.f32 1.0, %v2670_v62  ;;  %v2672_v7 = vpop.eup %2671 }
 0x5dd   :  { %2675 = vrcp.f32 %v1249_v60  ;;  %v2674_v1 = vpop.eup %2673 }
 0x5de   :  { %2677 = vrcp.f32 %v1250_v57  ;;  %v1251_v9 = vadd.f32 1.0, %v2674_v1 }
 0x5e0   :  { %2679 = vrcp.f32 %v1251_v9 }
 0x5e7   :  { %v2676_v17 = vpop.eup %2675 }
 0x5e8   :  { %v1263_v21 = vmul.f32 %v2676_v17, %v2672_v7  ;;  %v2678_v63 = vpop.eup %2677 }
 0x5e9   :  { %v1262_v59 = vmul.f32 %v2678_v63, %v1260_v61 }
 0x5ea   :  { %v2680_v11 = vpop.eup %2679 }
 0x5eb   :  { %v3422_v13 = vadd.f32 %v1263_v21, %v1262_v59 }
 0x5ed   :  { %2681 = vtanh.f32 %v3422_v13 }
 0x5f7   :  { %v2682_v20 = vpop.eup %2681 }
 0x5f8   :  { %v1266_v4 = vmul.f32 %v2682_v20, %v2680_v11 }
 0x5fa   :  { %1267 = vst [vmem:[#allocation2] sm:$0x4] %v1266_v4  ;;  %v1268_v19 = vpack.c.bf16 %v1266_v4, %v1266_v4 }
 0x5fc   :  { %v1270_v25 = vrot.slane %v1268_v19, 1 }
 0x5fe   :  { %1305 = vmatmul.mubr.bf16.vlgmr.msra.gmra.mrb[20].mxu0 %v1270_v25  ;;  %1346 = vmatmul.mubr.bf16.vlgmr.msra.gmra.mrb[20].mxu1 %v1270_v25 }
 0x5ff   :  { %1405 = vmatpush1.bf16.msra.mxu0 %v3186_v23  ;;  %1446 = vmatpush1.bf16.msra.mxu1 %v3188_v24 }
 0x600   :  { %1406 = vmatprep.subr.bf16.mxu0 %v3190_v27  ;;  %1447 = vmatprep.subr.bf16.mxu1 %v3192_v28 }
 0x601   :  { %1436 = vmatprep.mubr.bf16.mxu0 %v3021_v16  ;;  %1477 = vmatprep.mubr.bf16.mxu1 %v3021_v16 }
 0x603   :  { %1407 = vmatpush1.bf16.msra.mxu0 %v3196_v29  ;;  %1448 = vmatpush1.bf16.msra.mxu1 %v3198_v30 }
 0x604   :  { %1408 = vmatprep.subr.bf16.mxu0 %v3202_v33  ;;  %1449 = vmatprep.subr.bf16.mxu1 %v3204_v34 }
 0x607   :  { %1409 = vmatpush1.bf16.msra.mxu0 %v3210_v35  ;;  %1450 = vmatpush1.bf16.msra.mxu1 %v3212_v36 }
 0x608   :  { %1410 = vmatprep.subr.bf16.mxu0 %v3216_v37  ;;  %1451 = vmatprep.subr.bf16.mxu1 %v3218_v38 }
 0x60b   :  { %1411 = vmatpush1.bf16.msra.mxu0 %v3222_v39  ;;  %1452 = vmatpush1.bf16.msra.mxu1 %v3224_v40 }
 0x60c   :  { %1412 = vmatprep.subr.bf16.mxu0 %v3228_v41  ;;  %1453 = vmatprep.subr.bf16.mxu1 %v3230_v42 }
 0x60f   :  { %1413 = vmatpush1.bf16.msra.mxu0 %v3234_v43  ;;  %1454 = vmatpush1.bf16.msra.mxu1 %v3236_v44 }
 0x610   :  { %1414 = vmatprep.subr.bf16.mxu0 %v3240_v45  ;;  %1455 = vmatprep.subr.bf16.mxu1 %v3242_v46 }
 0x613   :  { %1415 = vmatpush1.bf16.msra.mxu0 %v3246_v47  ;;  %1456 = vmatpush1.bf16.msra.mxu1 %v3248_v48 }
 0x614   :  { %1416 = vmatprep.subr.bf16.mxu0 %v3252_v49  ;;  %1457 = vmatprep.subr.bf16.mxu1 %v3254_v50 }
 0x617   :  { %1417 = vmatpush1.bf16.msra.mxu0 %v3258_v51  ;;  %1458 = vmatpush1.bf16.msra.mxu1 %v3260_v52 }
 0x618   :  { %1418 = vmatprep.subr.bf16.mxu0 %v3264_v53  ;;  %1459 = vmatprep.subr.bf16.mxu1 %v3266_v54 }
 0x61b   :  { %1419 = vmatpush1.bf16.msra.mxu0 %v3270_v55  ;;  %1460 = vmatpush1.bf16.msra.mxu1 %v3272_v56 }
 0x61c   :  { %1534 = vmatprep.subr.bf16.mxu0 %v3178_v14  ;;  %1575 = vmatprep.subr.bf16.mxu1 %v3180_v15 }
 0x6d1   :  { %v1306_v58 = vpop.f32.mrb[20].mxu0  ;;  %v1347_v26 = vpop.f32.mrb[20].mxu1 }
 0x6d2   :  { %v1358_v12 = vrot.slane %v1306_v58, 5  ;;  %v1308_v18 = vpop.f32.mrb[21].mxu0  ;;  %v1349_v60 = vpop.f32.mrb[21].mxu1  ;;  %v1360_v59 = vrot.slane %v1347_v26, 5  ;;  %v1390_v26 = vrot.slane %v3422_v13, 7 }
 0x6d3   :  { %v1359_v62 = vrot.slane %v1308_v18, 5  ;;  %v1310_v57 = vpop.f32.mrb[22].mxu0  ;;  %v1351_v7 = vpop.f32.mrb[22].mxu1  ;;  %v1361_v11 = vrot.slane %v1349_v60, 5 }
 0x6d4   :  { %v1366_v1 = vadd.f32 %v1358_v12, %v3324_v8  ;;  %v1311_v17 = vpop.f32.mrb[23].mxu0  ;;  %v1352_v61 = vpop.f32.mrb[23].mxu1  ;;  %v1368_v20 = vadd.f32 %v1360_v59, %v3332_v0 }
 0x6d5   :  { %v1367_v21 = vadd.f32 %v1359_v62, %v3327_v10  ;;  %v1369_v4 = vadd.f32 %v1361_v11, %v3335_v6 }
 0x6d6   :  { %v2343_v63 = vmul.f32 -1.442695, %v1366_v1  ;;  %v2345_v19 = vmul.f32 -1.442695, %v1368_v20 }
 0x6d7   :  { %v2344_v9 = vmul.f32 -1.442695, %v1367_v21 }
 0x6d8   :  { %2683 = vpow2.f32 %v2343_v63 }
 0x6d9   :  { %2685 = vpow2.f32 %v2344_v9 }
 0x6da   :  { %2687 = vtanh.f32 %v1369_v4 }
 0x6db   :  { %2689 = vpow2.f32 %v2345_v19 }
 0x6e2   :  { %v2684_v25 = vpop.eup %2683 }
 0x6e3   :  { %v1379_v58 = vadd.f32 1.0, %v2684_v25  ;;  %v2686_v18 = vpop.eup %2685 }
 0x6e4   :  { %v1380_v12 = vadd.f32 1.0, %v2686_v18  ;;  %v2688_v62 = vpop.eup %2687 }
 0x6e5   :  { %2691 = vrcp.f32 %v1379_v58  ;;  %v2690_v57 = vpop.eup %2689 }
 0x6e6   :  { %2693 = vrcp.f32 %v1380_v12  ;;  %v1381_v17 = vadd.f32 1.0, %v2690_v57 }
 0x6e8   :  { %2695 = vrcp.f32 %v1381_v17 }
 0x6ef   :  { %v2692_v7 = vpop.eup %2691 }
 0x6f0   :  { %v1393_v1 = vmul.f32 %v2692_v7, %v2688_v62  ;;  %v2694_v60 = vpop.eup %2693 }
 0x6f1   :  { %v1392_v61 = vmul.f32 %v2694_v60, %v1390_v26 }
 0x6f2   :  { %v2696_v63 = vpop.eup %2695 }
 0x6f3   :  { %v3464_v21 = vadd.f32 %v1393_v1, %v1392_v61 }
 0x6f5   :  { %2697 = vtanh.f32 %v3464_v21 }
 0x6ff   :  { %v2698_v9 = vpop.eup %2697 }
 0x700   :  { %v1396_v59 = vmul.f32 %v2698_v9, %v2696_v63 }
 0x702   :  { %1397 = vst [vmem:[#allocation2] sm:$0x8] %v1396_v59  ;;  %v1398_v11 = vpack.c.bf16 %v1396_v59, %v1396_v59 }
 0x704   :  { %v1400_v20 = vshrl.u32 %v1398_v11, 16 }
 0x706   :  { %v1402_v4 = vrot.slane %v1400_v20, 1 }
 0x708   :  { %1437 = vmatmul.mubr.bf16.vlgmr.msra.gmra.mrb[24].mxu0 %v1402_v4  ;;  %1478 = vmatmul.mubr.bf16.vlgmr.msra.gmra.mrb[24].mxu1 %v1402_v4 }
 0x709   :  { %1535 = vmatpush1.bf16.msra.mxu0 %v3186_v23  ;;  %1576 = vmatpush1.bf16.msra.mxu1 %v3188_v24 }
 0x70a   :  { %1536 = vmatprep.subr.bf16.mxu0 %v3190_v27  ;;  %1577 = vmatprep.subr.bf16.mxu1 %v3192_v28 }
 0x70b   :  { %1566 = vmatprep.mubr.bf16.mxu0 %v3021_v16  ;;  %1607 = vmatprep.mubr.bf16.mxu1 %v3021_v16 }
 0x70d   :  { %1537 = vmatpush1.bf16.msra.mxu0 %v3196_v29  ;;  %1578 = vmatpush1.bf16.msra.mxu1 %v3198_v30 }
 0x70e   :  { %1538 = vmatprep.subr.bf16.mxu0 %v3202_v33  ;;  %1579 = vmatprep.subr.bf16.mxu1 %v3204_v34 }
 0x711   :  { %1539 = vmatpush1.bf16.msra.mxu0 %v3210_v35  ;;  %1580 = vmatpush1.bf16.msra.mxu1 %v3212_v36 }
 0x712   :  { %1540 = vmatprep.subr.bf16.mxu0 %v3216_v37  ;;  %1581 = vmatprep.subr.bf16.mxu1 %v3218_v38 }
 0x715   :  { %1541 = vmatpush1.bf16.msra.mxu0 %v3222_v39  ;;  %1582 = vmatpush1.bf16.msra.mxu1 %v3224_v40 }
 0x716   :  { %1542 = vmatprep.subr.bf16.mxu0 %v3228_v41  ;;  %1583 = vmatprep.subr.bf16.mxu1 %v3230_v42 }
 0x719   :  { %1543 = vmatpush1.bf16.msra.mxu0 %v3234_v43  ;;  %1584 = vmatpush1.bf16.msra.mxu1 %v3236_v44 }
 0x71a   :  { %1544 = vmatprep.subr.bf16.mxu0 %v3240_v45  ;;  %1585 = vmatprep.subr.bf16.mxu1 %v3242_v46 }
 0x71d   :  { %1545 = vmatpush1.bf16.msra.mxu0 %v3246_v47  ;;  %1586 = vmatpush1.bf16.msra.mxu1 %v3248_v48 }
 0x71e   :  { %1546 = vmatprep.subr.bf16.mxu0 %v3252_v49  ;;  %1587 = vmatprep.subr.bf16.mxu1 %v3254_v50 }
 0x721   :  { %1547 = vmatpush1.bf16.msra.mxu0 %v3258_v51  ;;  %1588 = vmatpush1.bf16.msra.mxu1 %v3260_v52 }
 0x722   :  { %1548 = vmatprep.subr.bf16.mxu0 %v3264_v53  ;;  %1589 = vmatprep.subr.bf16.mxu1 %v3266_v54 }
 0x725   :  { %1549 = vmatpush1.bf16.msra.mxu0 %v3270_v55  ;;  %1590 = vmatpush1.bf16.msra.mxu1 %v3272_v56 }
 0x726   :  { %1666 = vmatprep.subr.bf16.mxu0 %v3178_v14  ;;  %1707 = vmatprep.subr.bf16.mxu1 %v3180_v15 }
 0x7db   :  { %v1438_v13 = vpop.f32.mrb[24].mxu0  ;;  %v1479_v19 = vpop.f32.mrb[24].mxu1 }
 0x7dc   :  { %v1490_v25 = vrot.slane %v1438_v13, 4  ;;  %v1440_v58 = vpop.f32.mrb[25].mxu0  ;;  %v1481_v18 = vpop.f32.mrb[25].mxu1  ;;  %v1492_v14 = vrot.slane %v1479_v19, 4  ;;  %v1522_v19 = vrot.slane %v3464_v21, 7 }
 0x7dd   :  { %v1491_v12 = vrot.slane %v1440_v58, 4  ;;  %v1442_v62 = vpop.f32.mrb[26].mxu0  ;;  %v1483_v57 = vpop.f32.mrb[26].mxu1  ;;  %v1493_v15 = vrot.slane %v1481_v18, 4 }
 0x7de   :  { %v1498_v7 = vadd.f32 %v1490_v25, %v3324_v8  ;;  %v1443_v26 = vpop.f32.mrb[27].mxu0  ;;  %v1484_v1 = vpop.f32.mrb[27].mxu1  ;;  %v1500_v63 = vadd.f32 %v1492_v14, %v3332_v0 }
 0x7df   :  { %v1499_v60 = vadd.f32 %v1491_v12, %v3327_v10  ;;  %v1501_v9 = vadd.f32 %v1493_v15, %v3335_v6 }
 0x7e0   :  { %v2346_v17 = vmul.f32 -1.442695, %v1498_v7  ;;  %v2348_v59 = vmul.f32 -1.442695, %v1500_v63 }
 0x7e1   :  { %v2347_v61 = vmul.f32 -1.442695, %v1499_v60 }
 0x7e2   :  { %2699 = vpow2.f32 %v2346_v17 }
 0x7e3   :  { %2701 = vpow2.f32 %v2347_v61 }
 0x7e4   :  { %2703 = vtanh.f32 %v1501_v9 }
 0x7e5   :  { %2705 = vpow2.f32 %v2348_v59 }
 0x7ec   :  { %v2700_v11 = vpop.eup %2699 }
 0x7ed   :  { %v1511_v20 = vadd.f32 1.0, %v2700_v11  ;;  %v2702_v4 = vpop.eup %2701 }
 0x7ee   :  { %v1512_v13 = vadd.f32 1.0, %v2702_v4  ;;  %v2704_v25 = vpop.eup %2703 }
 0x7ef   :  { %2707 = vrcp.f32 %v1511_v20  ;;  %v2706_v58 = vpop.eup %2705 }
 0x7f0   :  { %2709 = vrcp.f32 %v1512_v13  ;;  %v1513_v57 = vadd.f32 1.0, %v2706_v58  ;;  %v2767_v58 = vld [vmem:[#allocation9 + $0x100] ss:$16 sps:$4 sm:$0xff]  }
 0x7f2   :  { %2711 = vrcp.f32 %v1513_v57  ;;  %v2772_v57 = vld [vmem:[#allocation9 + $0x128] ss:$16 sps:$4 sm:$0xff]  }
 0x7f9   :  { %v2708_v12 = vpop.eup %2707 }
 0x7fa   :  { %v1525_v62 = vmul.f32 %v2708_v12, %v2704_v25  ;;  %v2710_v18 = vpop.eup %2709  ;;  %v2768_v12 = vld [vmem:[#allocation9 + $0x108] ss:$16 sps:$4 sm:$0xff]  }
 0x7fb   :  { %v1524_v7 = vmul.f32 %v2710_v18, %v1522_v19  ;;  %v2769_v19 = vld [vmem:[#allocation9 + $0x124] ss:$16 sps:$4 sm:$0xff]   ;;  %v2771_v18 = vld [vmem:[#allocation9 + $0x120] ss:$16 sps:$4 sm:$0xff]  }
 0x7fc   :  { %v2712_v1 = vpop.eup %2711 }
 0x7fd   :  { %v3506_v26 = vadd.f32 %v1525_v62, %v1524_v7  ;;  %v2770_v62 = vld [vmem:[#allocation9 + $0x12c] ss:$16 sps:$4 sm:$0xff]   ;;  %v2773_v7 = vld [vmem:[#allocation9 + $0x144] ss:$16 sps:$4 sm:$0xff]  }
 0x7ff   :  { %2713 = vtanh.f32 %v3506_v26 }
 0x809   :  { %v2714_v60 = vpop.eup %2713 }
 0x80a   :  { %v1528_v17 = vmul.f32 %v2714_v60, %v2712_v1  ;;  %v2775_v1 = vld [vmem:[#allocation9 + $0x140] ss:$16 sps:$4 sm:$0xff]   ;;  %v2776_v60 = vld [vmem:[#allocation9 + $0x148] ss:$16 sps:$4 sm:$0xff]  }
 0x80c   :  { %1529 = vst [vmem:[#allocation2] sm:$0x10] %v1528_v17  ;;  %v1530_v61 = vpack.c.bf16 %v1528_v17, %v1528_v17  ;;  %v2777_v17 = vld [vmem:[#allocation9 + $0x164] ss:$16 sps:$4 sm:$0xff]  }
 0x80e   :  { %v1532_v14 = vrot.slane %v1530_v61, 2  ;;  %v2778_v61 = vld [vmem:[#allocation9 + $0x16c] ss:$16 sps:$4 sm:$0xff]  }
 0x810   :  { %1567 = vmatmul.mubr.bf16.vlgmr.msra.gmra.mrb[28].mxu0 %v1532_v14  ;;  %1608 = vmatmul.mubr.bf16.vlgmr.msra.gmra.mrb[28].mxu1 %v1532_v14  ;;  %v2779_v14 = vld [vmem:[#allocation9 + $0x160] ss:$16 sps:$4 sm:$0xff]  }
 0x811   :  { %1667 = vmatpush1.bf16.msra.mxu0 %v3186_v23  ;;  %1708 = vmatpush1.bf16.msra.mxu1 %v3188_v24  ;;  %v2765_v23 = vld [vmem:[#allocation9 + $0x104] ss:$16 sps:$4 sm:$0xff]   ;;  %v2766_v24 = vld [vmem:[#allocation9 + $0x10c] ss:$16 sps:$4 sm:$0xff]  }
 0x812   :  { %1668 = vmatprep.subr.bf16.mxu0 %v3190_v27  ;;  %1709 = vmatprep.subr.bf16.mxu1 %v3192_v28 }
 0x813   :  { %1698 = vmatprep.mubr.bf16.mxu0 %v3021_v16  ;;  %1739 = vmatprep.mubr.bf16.mxu1 %v3021_v16 }
 0x815   :  { %1669 = vmatpush1.bf16.msra.mxu0 %v3196_v29  ;;  %1710 = vmatpush1.bf16.msra.mxu1 %v3198_v30 }
 0x816   :  { %1670 = vmatprep.subr.bf16.mxu0 %v3202_v33  ;;  %1711 = vmatprep.subr.bf16.mxu1 %v3204_v34 }
 0x819   :  { %1671 = vmatpush1.bf16.msra.mxu0 %v3210_v35  ;;  %1712 = vmatpush1.bf16.msra.mxu1 %v3212_v36 }
 0x81a   :  { %1672 = vmatprep.subr.bf16.mxu0 %v3216_v37  ;;  %1713 = vmatprep.subr.bf16.mxu1 %v3218_v38 }
 0x81d   :  { %1673 = vmatpush1.bf16.msra.mxu0 %v3222_v39  ;;  %1714 = vmatpush1.bf16.msra.mxu1 %v3224_v40 }
 0x81e   :  { %1674 = vmatprep.subr.bf16.mxu0 %v3228_v41  ;;  %1715 = vmatprep.subr.bf16.mxu1 %v3230_v42 }
 0x821   :  { %1675 = vmatpush1.bf16.msra.mxu0 %v3234_v43  ;;  %1716 = vmatpush1.bf16.msra.mxu1 %v3236_v44 }
 0x822   :  { %1676 = vmatprep.subr.bf16.mxu0 %v3240_v45  ;;  %1717 = vmatprep.subr.bf16.mxu1 %v3242_v46 }
 0x825   :  { %1677 = vmatpush1.bf16.msra.mxu0 %v3246_v47  ;;  %1718 = vmatpush1.bf16.msra.mxu1 %v3248_v48 }
 0x826   :  { %1678 = vmatprep.subr.bf16.mxu0 %v3252_v49  ;;  %1719 = vmatprep.subr.bf16.mxu1 %v3254_v50 }
 0x829   :  { %1679 = vmatpush1.bf16.msra.mxu0 %v3258_v51  ;;  %1720 = vmatpush1.bf16.msra.mxu1 %v3260_v52 }
 0x82a   :  { %1680 = vmatprep.subr.bf16.mxu0 %v3264_v53  ;;  %1721 = vmatprep.subr.bf16.mxu1 %v3266_v54 }
 0x82d   :  { %1681 = vmatpush1.bf16.msra.mxu0 %v3270_v55  ;;  %1722 = vmatpush1.bf16.msra.mxu1 %v3272_v56  ;;  %v1652_v55 = vrot.slane %v3506_v26, 7  ;;  %v2774_v26 = vld [vmem:[#allocation9 + $0x14c] ss:$16 sps:$4 sm:$0xff]  }
 0x82e   :  { %1796 = vmatprep.subr.bf16.mxu0 %v2765_v23  ;;  %1837 = vmatprep.subr.bf16.mxu1 %v2766_v24  ;;  %v2780_v23 = vld [vmem:[#allocation9 + $0x168] ss:$16 sps:$4 sm:$0xff]   ;;  %v2781_v24 = vld [vmem:[#allocation9 + $0x184] ss:$16 sps:$4 sm:$0xff]  }
 0x8e3   :  { %v1568_v27 = vpop.f32.mrb[28].mxu0  ;;  %v1609_v28 = vpop.f32.mrb[28].mxu1 }
 0x8e4   :  { %v1620_v29 = vrot.slane %v1568_v27, 3  ;;  %v1570_v30 = vpop.f32.mrb[29].mxu0  ;;  %v1611_v33 = vpop.f32.mrb[29].mxu1  ;;  %v1622_v43 = vrot.slane %v1609_v28, 3  ;;  %v2782_v27 = vld [vmem:[#allocation9 + $0x18c] ss:$16 sps:$4 sm:$0xff]  }
 0x8e5   :  { %v1621_v34 = vrot.slane %v1570_v30, 3  ;;  %v1572_v35 = vpop.f32.mrb[30].mxu0  ;;  %v1613_v36 = vpop.f32.mrb[30].mxu1  ;;  %v1623_v44 = vrot.slane %v1611_v33, 3  ;;  %v2783_v28 = vld [vmem:[#allocation9 + $0x180] ss:$16 sps:$4 sm:$0xff]  }
 0x8e6   :  { %v1628_v37 = vadd.f32 %v1620_v29, %v3324_v8  ;;  %v1573_v38 = vpop.f32.mrb[31].mxu0  ;;  %v1614_v39 = vpop.f32.mrb[31].mxu1  ;;  %v1630_v45 = vadd.f32 %v1622_v43, %v3332_v0  ;;  %v2784_v29 = vld [vmem:[#allocation9 + $0x188] ss:$16 sps:$4 sm:$0xff]   ;;  %v2785_v30 = vld [vmem:[#allocation9 + $0x1a4] ss:$16 sps:$4 sm:$0xff]  }
 0x8e7   :  { %v1629_v40 = vadd.f32 %v1621_v34, %v3327_v10  ;;  %v1631_v46 = vadd.f32 %v1623_v44, %v3335_v6  ;;  %v2786_v33 = vld [vmem:[#allocation9 + $0x1ac] ss:$16 sps:$4 sm:$0xff]   ;;  %v2787_v34 = vld [vmem:[#allocation9 + $0x1a0] ss:$16 sps:$4 sm:$0xff]   ;;  %v2788_v35 = vld [vmem:[#allocation9 + $0x1a8] ss:$16 sps:$4 sm:$0xff]  }
 0x8e8   :  { %v2349_v41 = vmul.f32 -1.442695, %v1628_v37  ;;  %v2351_v47 = vmul.f32 -1.442695, %v1630_v45  ;;  %v2789_v36 = vld [vmem:[#allocation9 + $0x1c4] ss:$16 sps:$4 sm:$0xff]  }
 0x8e9   :  { %v2350_v42 = vmul.f32 -1.442695, %v1629_v40  ;;  %v2790_v37 = vld [vmem:[#allocation9 + $0x1cc] ss:$16 sps:$4 sm:$0xff]   ;;  %v2791_v38 = vld [vmem:[#allocation9 + $0x1c0] ss:$16 sps:$4 sm:$0xff]  }
 0x8ea   :  { %2715 = vpow2.f32 %v2349_v41  ;;  %v2792_v39 = vld [vmem:[#allocation9 + $0x1c8] ss:$16 sps:$4 sm:$0xff]   ;;  %v2793_v40 = vld [vmem:[#allocation9 + $0x1e4] ss:$16 sps:$4 sm:$0xff]   ;;  %v2794_v41 = vld [vmem:[#allocation9 + $0x1ec] ss:$16 sps:$4 sm:$0xff]  }
 0x8eb   :  { %2717 = vpow2.f32 %v2350_v42  ;;  %v2795_v42 = vld [vmem:[#allocation9 + $0x1e0] ss:$16 sps:$4 sm:$0xff]   ;;  %v2796_v43 = vld [vmem:[#allocation9 + $0x1e8] ss:$16 sps:$4 sm:$0xff]  }
 0x8ec   :  { %2719 = vtanh.f32 %v1631_v46 }
 0x8ed   :  { %2721 = vpow2.f32 %v2351_v47 }
 0x8f4   :  { %v2716_v48 = vpop.eup %2715 }
 0x8f5   :  { %v1641_v49 = vadd.f32 1.0, %v2716_v48  ;;  %v2718_v50 = vpop.eup %2717 }
 0x8f6   :  { %v1642_v51 = vadd.f32 1.0, %v2718_v50  ;;  %v2720_v52 = vpop.eup %2719 }
 0x8f7   :  { %2723 = vrcp.f32 %v1641_v49  ;;  %v2722_v53 = vpop.eup %2721 }
 0x8f8   :  { %2725 = vrcp.f32 %v1642_v51  ;;  %v1643_v15 = vadd.f32 1.0, %v2722_v53 }
 0x8fa   :  { %2727 = vrcp.f32 %v1643_v15 }
 0x901   :  { %v2724_v54 = vpop.eup %2723 }
 0x902   :  { %v1655_v56 = vmul.f32 %v2724_v54, %v2720_v52  ;;  %v2726_v21 = vpop.eup %2725 }
 0x903   :  { %v1654_v63 = vmul.f32 %v2726_v21, %v1652_v55 }
 0x904   :  { %v2728_v59 = vpop.eup %2727 }
 0x905   :  { %v3546_v9 = vadd.f32 %v1655_v56, %v1654_v63 }
 0x907   :  { %2729 = vtanh.f32 %v3546_v9 }
 0x911   :  { %v2730_v11 = vpop.eup %2729 }
 0x912   :  { %v1658_v20 = vmul.f32 %v2730_v11, %v2728_v59 }
 0x914   :  { %1659 = vst [vmem:[#allocation2] sm:$0x20] %v1658_v20  ;;  %v1660_v4 = vpack.c.bf16 %v1658_v20, %v1658_v20 }
 0x916   :  { %v1662_v13 = vshrl.u32 %v1660_v4, 16 }
 0x918   :  { %v1664_v25 = vrot.slane %v1662_v13, 2 }
 0x91a   :  { %1699 = vmatmul.mubr.bf16.vlgmr.msra.gmra.mrb[32].mxu0 %v1664_v25  ;;  %1740 = vmatmul.mubr.bf16.vlgmr.msra.gmra.mrb[32].mxu1 %v1664_v25 }
 0x91b   :  { %1797 = vmatpush1.bf16.msra.mxu0 %v2767_v58  ;;  %1838 = vmatpush1.bf16.msra.mxu1 %v2768_v12 }
 0x91c   :  { %1798 = vmatprep.subr.bf16.mxu0 %v2769_v19  ;;  %1839 = vmatprep.subr.bf16.mxu1 %v2770_v62 }
 0x91d   :  { %1828 = vmatprep.mubr.bf16.mxu0 %v3021_v16  ;;  %1869 = vmatprep.mubr.bf16.mxu1 %v3021_v16 }
 0x91f   :  { %1799 = vmatpush1.bf16.msra.mxu0 %v2771_v18  ;;  %1840 = vmatpush1.bf16.msra.mxu1 %v2772_v57  ;;  %v1784_v18 = vrot.slane %v3546_v9, 7  ;;  %v2601_v9 = vld [vmem:[#allocation8 + $0x40] sm:$0xff]  }
 0x920   :  { %1800 = vmatprep.subr.bf16.mxu0 %v2773_v7  ;;  %1841 = vmatprep.subr.bf16.mxu1 %v2774_v26 }
 0x923   :  { %1801 = vmatpush1.bf16.msra.mxu0 %v2775_v1  ;;  %1842 = vmatpush1.bf16.msra.mxu1 %v2776_v60 }
 0x924   :  { %1802 = vmatprep.subr.bf16.mxu0 %v2777_v17  ;;  %1843 = vmatprep.subr.bf16.mxu1 %v2778_v61 }
 0x927   :  { %1803 = vmatpush1.bf16.msra.mxu0 %v2779_v14  ;;  %1844 = vmatpush1.bf16.msra.mxu1 %v2780_v23 }
 0x928   :  { %1804 = vmatprep.subr.bf16.mxu0 %v2781_v24  ;;  %1845 = vmatprep.subr.bf16.mxu1 %v2782_v27  ;;  %v2602_v27 = vld [vmem:[#allocation8 + $0x48] sm:$0xff]  }
 0x92b   :  { %1805 = vmatpush1.bf16.msra.mxu0 %v2783_v28  ;;  %1846 = vmatpush1.bf16.msra.mxu1 %v2784_v29  ;;  %v2603_v28 = vld [vmem:[#allocation8 + $0x50] sm:$0xff]   ;;  %v2604_v29 = vld [vmem:[#allocation8 + $0x58] sm:$0xff]  }
 0x92c   :  { %1806 = vmatprep.subr.bf16.mxu0 %v2785_v30  ;;  %1847 = vmatprep.subr.bf16.mxu1 %v2786_v33  ;;  %v2605_v30 = vld [vmem:[#allocation8 + $0x60] sm:$0xff]   ;;  %v2607_v33 = vld [vmem:[#allocation8 + $0x70] sm:$0xff]  }
 0x92f   :  { %1807 = vmatpush1.bf16.msra.mxu0 %v2787_v34  ;;  %1848 = vmatpush1.bf16.msra.mxu1 %v2788_v35  ;;  %v2608_v34 = vld [vmem:[#allocation8 + $0x78] sm:$0xff]   ;;  %v2609_v35 = vld [vmem:[#allocation11] ss:$8 sps:$4 sm:$0xff]  }
 0x930   :  { %1808 = vmatprep.subr.bf16.mxu0 %v2789_v36  ;;  %1849 = vmatprep.subr.bf16.mxu1 %v2790_v37  ;;  %v2611_v36 = vld [vmem:[#allocation11 + $0x4] ss:$8 sps:$4 sm:$0xff]   ;;  %v2614_v37 = vld [vmem:[#allocation11 + $0x14] ss:$8 sps:$4 sm:$0xff]  }
 0x933   :  { %1809 = vmatpush1.bf16.msra.mxu0 %v2791_v38  ;;  %1850 = vmatpush1.bf16.msra.mxu1 %v2792_v39  ;;  %v2612_v38 = vld [vmem:[#allocation11 + $0x10] ss:$8 sps:$4 sm:$0xff]   ;;  %v2617_v39 = vld [vmem:[#allocation11 + $0x24] ss:$8 sps:$4 sm:$0xff]  }
 0x934   :  { %1810 = vmatprep.subr.bf16.mxu0 %v2793_v40  ;;  %1851 = vmatprep.subr.bf16.mxu1 %v2794_v41  ;;  %v2615_v40 = vld [vmem:[#allocation11 + $0x20] ss:$8 sps:$4 sm:$0xff]   ;;  %v2620_v41 = vld [vmem:[#allocation11 + $0x34] ss:$8 sps:$4 sm:$0xff]  }
 0x937   :  { %1811 = vmatpush1.bf16.msra.mxu0 %v2795_v42  ;;  %1852 = vmatpush1.bf16.msra.mxu1 %v2796_v43  ;;  %v2618_v42 = vld [vmem:[#allocation11 + $0x30] ss:$8 sps:$4 sm:$0xff]   ;;  %v2623_v43 = vld [vmem:[#allocation11 + $0x44] ss:$8 sps:$4 sm:$0xff]  }
 0x938   :  { %2443 = vmatprep.subr.bf16.mxu0 %v3019_v22  ;;  %2145 = vmatprep.subr.bf16.mxu1 %v2611_v36 }
 0x9ed   :  { %v1700_v44 = vpop.f32.mrb[32].mxu0  ;;  %v1741_v45 = vpop.f32.mrb[32].mxu1 }
 0x9ee   :  { %v1752_v46 = vrot.slane %v1700_v44, 2  ;;  %v1702_v47 = vpop.f32.mrb[33].mxu0  ;;  %v1743_v48 = vpop.f32.mrb[33].mxu1  ;;  %v1754_v15 = vrot.slane %v1741_v45, 2  ;;  %v2621_v44 = vld [vmem:[#allocation11 + $0x40] ss:$8 sps:$4 sm:$0xff]  }
 0x9ef   :  { %v1753_v49 = vrot.slane %v1702_v47, 2  ;;  %v1704_v50 = vpop.f32.mrb[34].mxu0  ;;  %v1745_v51 = vpop.f32.mrb[34].mxu1  ;;  %v1755_v63 = vrot.slane %v1743_v48, 2  ;;  %v2624_v45 = vld [vmem:[#allocation11 + $0x50] ss:$8 sps:$4 sm:$0xff]  }
 0x9f0   :  { %v1760_v52 = vadd.f32 %v1752_v46, %v3324_v8  ;;  %v1705_v53 = vpop.f32.mrb[35].mxu0  ;;  %v1746_v54 = vpop.f32.mrb[35].mxu1  ;;  %v1762_v59 = vadd.f32 %v1754_v15, %v3332_v0  ;;  %v2629_v46 = vld [vmem:[#allocation11 + $0x64] ss:$8 sps:$4 sm:$0xff]   ;;  %v2627_v47 = vld [vmem:[#allocation11 + $0x60] ss:$8 sps:$4 sm:$0xff]  }
 0x9f1   :  { %v1761_v55 = vadd.f32 %v1753_v49, %v3327_v10  ;;  %v1763_v11 = vadd.f32 %v1755_v63, %v3335_v6 }
 0x9f2   :  { %v2352_v56 = vmul.f32 -1.442695, %v1760_v52  ;;  %v2354_v20 = vmul.f32 -1.442695, %v1762_v59 }
 0x9f3   :  { %v2353_v21 = vmul.f32 -1.442695, %v1761_v55 }
 0x9f4   :  { %2731 = vpow2.f32 %v2352_v56 }
 0x9f5   :  { %2733 = vpow2.f32 %v2353_v21 }
 0x9f6   :  { %2735 = vtanh.f32 %v1763_v11 }
 0x9f7   :  { %2737 = vpow2.f32 %v2354_v20 }
 0x9fe   :  { %v2732_v4 = vpop.eup %2731 }
 0x9ff   :  { %v1773_v13 = vadd.f32 1.0, %v2732_v4  ;;  %v2734_v25 = vpop.eup %2733 }
 0xa00   :  { %v1774_v58 = vadd.f32 1.0, %v2734_v25  ;;  %v2736_v12 = vpop.eup %2735 }
 0xa01   :  { %2739 = vrcp.f32 %v1773_v13  ;;  %v2738_v19 = vpop.eup %2737 }
 0xa02   :  { %2741 = vrcp.f32 %v1774_v58  ;;  %v1775_v26 = vadd.f32 1.0, %v2738_v19 }
 0xa04   :  { %2743 = vrcp.f32 %v1775_v26 }
 0xa0b   :  { %v2740_v62 = vpop.eup %2739 }
 0xa0c   :  { %v1787_v57 = vmul.f32 %v2740_v62, %v2736_v12  ;;  %v2742_v7 = vpop.eup %2741 }
 0xa0d   :  { %v1786_v1 = vmul.f32 %v2742_v7, %v1784_v18 }
 0xa0e   :  { %v2744_v17 = vpop.eup %2743 }
 0xa0f   :  { %v3557_v60 = vadd.f32 %v1787_v57, %v1786_v1 }
 0xa11   :  { %2745 = vtanh.f32 %v3557_v60  ;;  %v1914_v7 = vrot.slane %v3557_v60, 7  ;;  %v2358_v60 = vld [vmem:[#allocation12 + $0x6] ss:$0 sm:$0xff] }
 0xa1b   :  { %v2746_v61 = vpop.eup %2745 }
 0xa1c   :  { %v1790_v14 = vmul.f32 %v2746_v61, %v2744_v17 }
 0xa1e   :  { %1791 = vst [vmem:[#allocation2] sm:$0x40] %v1790_v14  ;;  %v1792_v23 = vpack.c.bf16 %v1790_v14, %v1790_v14 }
 0xa20   :  { %v1794_v24 = vrot.slane %v1792_v23, 3 }
 0xa22   :  { %1829 = vmatmul.mubr.bf16.vlgmr.msra.gmra.mrb[36].mxu0 %v1794_v24  ;;  %1870 = vmatmul.mubr.bf16.vlgmr.msra.gmra.mrb[36].mxu1 %v1794_v24 }
 0xa23   :  { %2459 = vmatprep.mubr.msk.bf16.mxu0 %vm3020_vm0, %v3019_v22  ;;  %2177 = vmatprep.mubr.bf16.mxu1 %v3021_v16  ;;  %v2606_v16 = vld [vmem:[#allocation8 + $0x68] sm:$0xff]  }
 0xa24   :  { %2444 = vmatpush3.bf16.msra.mxu0 %v2601_v9  ;;  %2146 = vmatpush1.bf16.msra.mxu1 %v2609_v35 }
 0xa25   :  { %2445 = vmatprep.subr.bf16.mxu0 %v3019_v22  ;;  %2147 = vmatprep.subr.bf16.mxu1 %v2614_v37  ;;  %v111_v37 = vld [vmem:[#allocation12 + $0x7] sm:$0x3] }
 0xa28   :  { %2446 = vmatpush3.bf16.msra.mxu0 %v2602_v27  ;;  %2148 = vmatpush1.bf16.msra.mxu1 %v2612_v38  ;;  %v2632_v27 = vld [vmem:[#allocation11 + $0x74] ss:$8 sps:$4 sm:$0xff]   ;;  %v2058_v38 = vrot.slane %v111_v37, %v447_v3 }
 0xa29   :  { %2447 = vmatprep.subr.bf16.mxu0 %v3019_v22  ;;  %2149 = vmatprep.subr.bf16.mxu1 %v2617_v39  ;;  %v2062_v39 = vrot.slane %v111_v37, %v451_v5 }
 0xa2c   :  { %2448 = vmatpush3.bf16.msra.mxu0 %v2603_v28  ;;  %2150 = vmatpush1.bf16.msra.mxu1 %v2615_v40  ;;  %v2630_v28 = vld [vmem:[#allocation11 + $0x70] ss:$8 sps:$4 sm:$0xff]  }
 0xa2d   :  { %2449 = vmatprep.subr.bf16.mxu0 %v3019_v22  ;;  %2151 = vmatprep.subr.bf16.mxu1 %v2620_v41 }
 0xa30   :  { %2450 = vmatpush3.bf16.msra.mxu0 %v2604_v29  ;;  %2152 = vmatpush1.bf16.msra.mxu1 %v2618_v42 }
 0xa31   :  { %2451 = vmatprep.subr.bf16.mxu0 %v3019_v22  ;;  %2153 = vmatprep.subr.bf16.mxu1 %v2623_v43 }
 0xa34   :  { %2452 = vmatpush3.bf16.msra.mxu0 %v2605_v30  ;;  %2154 = vmatpush1.bf16.msra.mxu1 %v2621_v44 }
 0xa35   :  { %2453 = vmatprep.subr.bf16.mxu0 %v3019_v22 }
 0xa38   :  { %2454 = vmatpush3.bf16.msra.mxu0 %v2606_v16 }
 0xa39   :  { %2455 = vmatprep.subr.bf16.mxu0 %v3019_v22 }
 0xa3c   :  { %2456 = vmatpush3.bf16.msra.mxu0 %v2607_v33 }
 0xa3d   :  { %2457 = vmatprep.subr.bf16.mxu0 %v3019_v22  ;;  %v2626_v22 = vld [vmem:[#allocation11 + $0x54] ss:$8 sps:$4 sm:$0xff]  }
 0xa3e   :  { %2155 = vmatprep.subr.bf16.mxu1 %v2626_v22 }
 0xa3f   :  { %2156 = vmatpush1.bf16.msra.mxu1 %v2624_v45 }
 0xa40   :  { %2458 = vmatpush3.bf16.msra.mxu0 %v2608_v34  ;;  %2157 = vmatprep.subr.bf16.mxu1 %v2629_v46 }
 0xa43   :  { %2158 = vmatpush1.bf16.msra.mxu1 %v2627_v47 }
 0xa44   :  { %2159 = vmatprep.subr.bf16.mxu1 %v2632_v27 }
 0xa47   :  { %2160 = vmatpush1.bf16.msra.mxu1 %v2630_v28 }
 0xaf5   :  { %v1830_v48 = vpop.f32.mrb[36].mxu0  ;;  %v1871_v49 = vpop.f32.mrb[36].mxu1 }
 0xaf6   :  { %v1882_v50 = vrot.slane %v1830_v48, 1  ;;  %v1832_v51 = vpop.f32.mrb[37].mxu0  ;;  %v1873_v52 = vpop.f32.mrb[37].mxu1  ;;  %v1884_v20 = vrot.slane %v1871_v49, 1 }
 0xaf7   :  { %v1883_v53 = vrot.slane %v1832_v51, 1  ;;  %v1834_v54 = vpop.f32.mrb[38].mxu0  ;;  %v1875_v55 = vpop.f32.mrb[38].mxu1  ;;  %v1885_v4 = vrot.slane %v1873_v52, 1 }
 0xaf8   :  { %v1890_v56 = vadd.f32 %v1882_v50, %v3324_v8  ;;  %v1835_v21 = vpop.f32.mrb[39].mxu0  ;;  %v1876_v15 = vpop.f32.mrb[39].mxu1  ;;  %v1892_v13 = vadd.f32 %v1884_v20, %v3332_v0 }
 0xaf9   :  { %v1891_v63 = vadd.f32 %v1883_v53, %v3327_v10  ;;  %v1893_v25 = vadd.f32 %v1885_v4, %v3335_v6 }
 0xafa   :  { %v2355_v59 = vmul.f32 -1.442695, %v1890_v56  ;;  %v2357_v58 = vmul.f32 -1.442695, %v1892_v13 }
 0xafb   :  { %v2356_v11 = vmul.f32 -1.442695, %v1891_v63 }
 0xafc   :  { %2747 = vpow2.f32 %v2355_v59 }
 0xafd   :  { %2749 = vpow2.f32 %v2356_v11 }
 0xafe   :  { %2751 = vtanh.f32 %v1893_v25 }
 0xaff   :  { %2753 = vpow2.f32 %v2357_v58 }
 0xb06   :  { %v2748_v12 = vpop.eup %2747 }
 0xb07   :  { %v1903_v19 = vadd.f32 1.0, %v2748_v12  ;;  %v2750_v62 = vpop.eup %2749 }
 0xb08   :  { %v1904_v8 = vadd.f32 1.0, %v2750_v62  ;;  %v2752_v10 = vpop.eup %2751 }
 0xb09   :  { %2755 = vrcp.f32 %v1903_v19  ;;  %v2754_v18 = vpop.eup %2753 }
 0xb0a   :  { %2757 = vrcp.f32 %v1904_v8  ;;  %v1905_v17 = vadd.f32 1.0, %v2754_v18 }
 0xb0c   :  { %2759 = vrcp.f32 %v1905_v17 }
 0xb13   :  { %v2756_v57 = vpop.eup %2755 }
 0xb14   :  { %v1917_v26 = vmul.f32 %v2756_v57, %v2752_v10  ;;  %v2758_v1 = vpop.eup %2757 }
 0xb15   :  { %v1916_v0 = vmul.f32 %v2758_v1, %v1914_v7 }
 0xb16   :  { %v2760_v6 = vpop.eup %2759 }
 0xb17   :  { %v1918_v61 = vadd.f32 %v1917_v26, %v1916_v0 }
 0xb19   :  { %2761 = vtanh.f32 %v1918_v61  ;;  %1923 = vst [vmem:[#allocation17 - $0x7] sm:$0x80] %v1918_v61 }
 0xb23   :  { %v2762_v14 = vpop.eup %2761 }
 0xb24   :  { %v1920_v23 = vmul.f32 %v2762_v14, %v2760_v6 }
 0xb26   :  { %1921 = vst [vmem:[#allocation2] sm:$0x80] %v1920_v23  ;;  %1922 = vst [vmem:[#allocation15 - $0x7] sm:$0x80] %v1920_v23 }
 0xb2d   :  { %v1924_v24 = vld [vmem:[#allocation2] sm:$0xff] }
 0xb2e   :  { %v1925_v9 = vpack.c.bf16 %v1924_v24, %v1924_v24 }
 0xb30   :  { %2460 = vmatmul.mubr.bf16.vlgmr.msra.gmra.mrb[40].mxu0 %v1925_v9 }
 0xc03   :  { %v2030_v29 = vpop.f32.mrb[40].mxu0 }
 0xc04   :  { %v2031_v30 = vadd.f32 %v2358_v60, %v2030_v29  ;;  %v2461_v16 = vpop.f32.mrb[41].mxu0 }
 0xc05   :  { %v2033_v33 = vpop.f32.mrb[42].mxu0 }
 0xc06   :  { %v2036_v34 = vmax.f32 %v2031_v30, 0.0  ;;  %v2462_v35 = vpop.f32.mrb[43].mxu0 }
 0xc08   :  { %v2037_v36 = vpack.c.bf16 %v2036_v34, %v2036_v34 }
 0xc0a   :  { %2178 = vmatmul.mubr.bf16.vlgmr.msra.gmra.mrb[40].mxu1 %v2037_v36 }
 0xcdd   :  { %v2179_v40 = vpop.f32.mrb[40].mxu1 }
 0xcde   :  { %v2180_v41 = vadd.f32 %v2179_v40, %v2058_v38  ;;  %v2181_v42 = vpop.f32.mrb[41].mxu1 }
 0xcdf   :  { %v2182_v43 = vadd.f32 %v2181_v42, %v2062_v39  ;;  %v2183_v44 = vpop.f32.mrb[42].mxu1 }
 0xce0   :  { %v2186_v22 = vmul.f32 %v2180_v41, %v2180_v41  ;;  %v2184_v45 = vpop.f32.mrb[43].mxu1 }
 0xce1   :  { %v2187_v46 = vmul.f32 %v2182_v43, %v2182_v43 }
 0xce3   :  { %v2188_v47 = vadd.f32 %v2187_v46, %v2186_v22 }
 0xce5   :  { %2189 = vadd.xlane.f32.xlu0 %v2188_v47 }
 0xce6   :  { %2940 = shalt.err (!%p2937_p10)
}
 0xce7   :  { %s2941_s19 = scalar_lea.hbm %s3624_s7, 16 }
 0xce8   :  { %p2942_p11 = scmp.ne.s32.totalorder %s3624_s7, %s2941_s19  ;;  %p2945_p12 = scmp.lt.u32.totalorder %s2941_s19, %s3624_s7 }
 0xcea   :  { %p2947_p13 = pnand %p2945_p12, %p2942_p11 }
 0xcec   :  { %2950 = shalt.err (!%p2947_p13)
}
 0xced   :  { %2218 = dma.vmem_to_hbm [thread:$0]  %s2216_s11, 16, %s3624_s7, [#allocation16]  }
 0xcee   :  { %s3023_s16 = smov [#allocation17]  }
 0xcef   :  { %s2225_s13 = sshll.u32 %s3023_s16, 4  ;;  %s2226_s13 = int_to_ptr.vmem [resolvable:$true] %s2225_s13 }
 0xcf0   :  { %s2951_s20 = scalar_lea.vmem %s2226_s13, 16  ;;  %s2955_s24 = scalar_lea.vmem %s2226_s13, 32 }
 0xcf1   :  { %p2952_p0 = scmp.ne.s32.totalorder %s2226_s13, %s2951_s20  ;;  %p2956_p1 = scmp.lt.s32.totalorder %s2226_s13, %s2226_s13 }
 0xcf2   :  { %p2957_p2 = scmp.lt.s32.totalorder %s2955_s24, %s2951_s20 }
 0xcf4   :  { %p2958_p3 = por %p2957_p2, %p2956_p1 }
 0xcf6   :  { %p2959_p4 = pnand %p2958_p3, %p2952_p0 }
 0xcf8   :  { %2962 = shalt.err (!%p2959_p4)
}
 0xcf9   :  { %s2963_s27 = scalar_lea.hbm %s3625_s8, 16 }
 0xcfa   :  { %p2964_p5 = scmp.ne.s32.totalorder %s3625_s8, %s2963_s27  ;;  %p2967_p6 = scmp.lt.u32.totalorder %s2963_s27, %s3625_s8 }
 0xcfc   :  { %p2969_p7 = pnand %p2967_p6, %p2964_p5 }
 0xcfe   :  { %2972 = shalt.err (!%p2969_p7)
}
 0xcff   :  { %2228 = dma.vmem_to_hbm [thread:$0]  %s2226_s13, 16, %s3625_s8, [#allocation16]  }
 0xd00   :  { %s3024_s4 = smov [#allocation14]  }
 0xd01   :  { %s2205_s0 = sshll.u32 %s3024_s4, 4  ;;  %s2206_s0 = int_to_ptr.vmem [resolvable:$true] %s2205_s0 }
 0xd02   :  { %s2973_s10 = scalar_lea.vmem %s2206_s0, 256  ;;  %p2978_p9 = scmp.lt.s32.totalorder %s2206_s0, %s2206_s0 }
 0xd03   :  { %p2974_p8 = scmp.ne.s32.totalorder %s2206_s0, %s2973_s10  ;;  %p2979_p10 = scmp.lt.s32.totalorder %s2973_s10, %s2973_s10 }
 0xd05   :  { %p2980_p11 = por %p2979_p10, %p2978_p9 }
 0xd07   :  { %p2981_p12 = pnand %p2980_p11, %p2974_p8 }
 0xd72   :  { %v2190_v2 = vpop.xlane.xlu0 %2189 }
 0xd73   :  { %v2191_v3 = vmax.f32 %v2190_v2, 1e-24 }
 0xd75   :  { %2763 = vrsqrt.f32 %v2191_v3 }
 0xd7f   :  { %v2764_v5 = vpop.eup %2763 }
 0xd80   :  { %v2193_v48 = vmul.f32 %v2764_v5, %v2180_v41  ;;  %v2194_v49 = vmul.f32 %v2764_v5, %v2182_v43 }
 0xd82   :  { %v2195_v50 = vadd.f32 %v2193_v48, %v3169_v32  ;;  %v2196_v51 = vadd.f32 %v2194_v49, %v3166_v31 }
 0xd84   :  { %2197 = vst [vmem:[#allocation14] sm:$0xff] %v2195_v50  ;;  %2198 = vst [vmem:[#allocation14 + $0x8] sm:$0xff] %v2196_v51 }
 0xd85   :  { %2984 = shalt.err (!%p2981_p12)
}
 0xd86   :  { %s2985_s11 = scalar_lea.hbm %s3623_s6, 256 }
 0xd87   :  { %p2986_p13 = scmp.ne.s32.totalorder %s3623_s6, %s2985_s11  ;;  %p2989_p0 = scmp.lt.u32.totalorder %s2985_s11, %s3623_s6 }
 0xd89   :  { %p2991_p1 = pnand %p2989_p0, %p2986_p13 }
 0xd8b   :  { %2994 = shalt.err (!%p2991_p1)
}
 0xd8c   :  { %2208 = dma.vmem_to_hbm [thread:$0]  %s2206_s0, 256, %s3623_s6, [#allocation5]  }
 0xd8d   :  { %3003 = dma.done.wait [#allocation5], 256  }
 0xd8e   :  { %3004 = vsyncadd [#allocation5], 4294967040 }
 0xd8f   :  { %3005 = dma.done.wait [#allocation16], 32  }
 0xd90   :  { %3006 = vsyncadd [#allocation16], 4294967264 }
 0xd91   :  { %2238 = vsyncpa [#allocation4], 1 }
 0xd92   :  { %2239 = vsyncpa [#allocation7], 1 }
 0xd93   :  { %2240 = vsyncpa [#allocation10], 1 }
 0xd94   :  { %2241 = vsyncpa [#allocation13], 1 }
 0xd95   :  { %2242 = vsyncpa [#allocation5], 1 }
 0xd96   :  { %2243 = vsyncpa [#allocation16], 1 }

</bundles_post_ra>
